<compile_context>
chip_gen: v6e
topology: v6e:2x2x1
jax: 0.10.0
libtpu: 0.0.40
codegen_flags: <defaults>
</compile_context>

<pallas_src>
import functools

import jax
import jax.numpy as jnp
from jax import lax
from jax.experimental import pallas as pl
from jax.experimental.pallas import tpu as pltpu


# ----------------------------- Pallas kernel --------------------------------

def resblock_kernel(x_ref, w1_ref, s1_ref, b1_ref,
                    w2_ref, s2_ref, b2_ref,
                    ws_ref, ss_ref, bs_ref,
                    masks_ref, o_ref,
                    xpad_ref, hpad_ref, *, width, pad_l):
    """Fused ResBlock for one image; activations laid out as (C, H*W) (pixels on lanes).

    x_ref     : (1, Cin, P)        bf16  flattened NCHW image
    w1_ref    : (9, Cb, Cin)       bf16  conv1 taps, t = ki*3 + kj
    w2_ref    : (9, Cb, Cb)        bf16  conv2 taps
    ws_ref    : (Cout, Cin)        f32   1x1 shortcut weight (bf16-rounded values)
    s*_/b*_   : (C, 1)             f32   folded BN scale / bias
    masks_ref : (9, P)             f32   1.0 where the tap's neighbour is inside the image
    o_ref     : (1, Cout, P)       f32
    xpad_ref  : (Cin, P + 2*pad_l) f32   scratch, zero borders for shifted-window reads
    hpad_ref  : (Cb,  P + 2*pad_l) f32   scratch
    """
    P = o_ref.shape[-1]
    cin = x_ref.shape[1]
    cout = o_ref.shape[1]

    masks = masks_ref[...]                                    # (9, P) f32, loaded once

    def conv3x3(pad_ref, w_ref):
        """sum_t W_t @ shift_t(src): 9 shifted slabs, 9 small bf16 MXU dots, f32 accum."""
        src = pad_ref[...]                                    # (C, P + 2*pad_l) f32
        acc = jnp.zeros((w_ref.shape[1], P), jnp.float32)
        t = 0
        for dy in (-1, 0, 1):
            for dx in (-1, 0, 1):
                off = pad_l + dy * width + dx                 # static lane offset
                tap = src[:, off:off + P] * masks[t:t + 1, :]
                acc = acc + jnp.dot(w_ref[t], tap.astype(jnp.bfloat16),
                                    preferred_element_type=jnp.float32)
                t += 1
        return acc

    # ---- conv1 (3x3, pad=1) -> folded BN -> ReLU; h never leaves VMEM ------
    xpad_ref[...] = jnp.zeros_like(xpad_ref)
    xpad_ref[:, pad_l:pad_l + P] = x_ref[0].astype(jnp.float32)
    h = conv3x3(xpad_ref, w1_ref)
    h = jnp.maximum(h * s1_ref[...] + b1_ref[...], 0.0)       # (Cb, P) f32

    # ---- conv2 (3x3, pad=1) -> folded BN (no activation) -------------------
    hpad_ref[...] = jnp.zeros_like(hpad_ref)
    hpad_ref[:, pad_l:pad_l + P] = h
    main = conv3x3(hpad_ref, w2_ref)
    main = main * s2_ref[...] + b2_ref[...]                   # (Cb, P) f32

    # ---- 1x1 shortcut -> folded BN, on the VPU (tiny contraction: skip MXU) -
    xf = x_ref[0].astype(jnp.float32)                         # (Cin, P)
    short = jnp.zeros((cout, P), jnp.float32)
    for ci in range(cin):
        short = short + ws_ref[:, ci:ci + 1] * xf[ci:ci + 1, :]
    short = short * ss_ref[...] + bs_ref[...]

    # ---- residual add + final ReLU; lane-dense store (last dim = P) --------
    o_ref[0] = jnp.maximum(main + short, 0.0).astype(o_ref.dtype)


# ----------------------------- wrapper ---------------------------------------

def resblock_forward(x_nchw, params):
    """Fused ResBlock forward. Input NCHW float32 -> output NCHW float32."""
    n, cin, h, w = x_nchw.shape
    p = h * w
    cb = params["w1"].shape[-1]
    cout = params["ws"].shape[-1]
    # residual add requires the main branch width (Cb) to equal the shortcut width.
    assert cb == cout, "ResBlock(ConvBlock) requires block_base_channel == output_channel"
    # TODO(synk): stride > 1 (strided conv1 + strided 1x1 shortcut) is not implemented in
    # the fused kernel; the module default stride=1 is used here.

    pad_l = ((w + 1 + 127) // 128) * 128       # lane-aligned interior offset in scratch

    # NCHW -> (N, Cin, H*W): pure reshape, no transpose; pixel axis is the lane dim.
    x_flat = x_nchw.reshape(n, cin, p).astype(jnp.bfloat16)

    # per-tap conv weights, tap index t = ki*3 + kj, each tap is (C_out_conv, C_in_conv)
    w1 = jnp.transpose(params["w1"], (0, 1, 3, 2)).reshape(9, cb, cin).astype(jnp.bfloat16)
    w2 = jnp.transpose(params["w2"], (0, 1, 3, 2)).reshape(9, cb, cb).astype(jnp.bfloat16)
    # 1x1 shortcut weight: bf16-rounded values kept in f32 for the VPU FMA path
    ws = params["ws"].reshape(cin, cout).T.astype(jnp.bfloat16).astype(jnp.float32)

    s1 = params["s1"].reshape(cb, 1);   b1 = params["b1"].reshape(cb, 1)
    s2 = params["s2"].reshape(cb, 1);   b2 = params["b2"].reshape(cb, 1)
    ss = params["ss"].reshape(cout, 1); bs = params["bs"].reshape(cout, 1)

    # validity masks for the 9 taps (0 where the neighbour falls outside the image)
    rr = jnp.arange(p, dtype=jnp.int32) // w
    cc = jnp.arange(p, dtype=jnp.int32) % w
    mask_list = []
    for dy in (-1, 0, 1):
        for dx in (-1, 0, 1):
            mask_list.append((rr + dy >= 0) & (rr + dy < h)
                             & (cc + dx >= 0) & (cc + dx < w))
    masks = jnp.stack(mask_list, axis=0).astype(jnp.float32)              # (9, P)

    flops = 2 * n * p * (9 * cin * cb + 9 * cb * cb + cin * cout)
    bytes_accessed = (x_flat.size * 2 + (w1.size + w2.size) * 2
                      + (ws.size + s1.size + b1.size + s2.size + b2.size
                         + ss.size + bs.size + masks.size) * 4
                      + n * cout * p * 4)

    kernel = functools.partial(resblock_kernel, width=w, pad_l=pad_l)
    y = pl.pallas_call(
        kernel,
        out_shape=jax.ShapeDtypeStruct((n, cout, p), jnp.float32),
        grid=(n,),
        in_specs=[
            pl.BlockSpec((1, cin, p), lambda i: (i, 0, 0)),
            pl.BlockSpec((9, cb, cin), lambda i: (0, 0, 0)),
            pl.BlockSpec((cb, 1), lambda i: (0, 0)),
            pl.BlockSpec((cb, 1), lambda i: (0, 0)),
            pl.BlockSpec((9, cb, cb), lambda i: (0, 0, 0)),
            pl.BlockSpec((cb, 1), lambda i: (0, 0)),
            pl.BlockSpec((cb, 1), lambda i: (0, 0)),
            pl.BlockSpec((cout, cin), lambda i: (0, 0)),
            pl.BlockSpec((cout, 1), lambda i: (0, 0)),
            pl.BlockSpec((cout, 1), lambda i: (0, 0)),
            pl.BlockSpec((9, p), lambda i: (0, 0)),
        ],
        out_specs=pl.BlockSpec((1, cout, p), lambda i: (i, 0, 0)),
        scratch_shapes=[
            pltpu.VMEM((cin, p + 2 * pad_l), jnp.float32),
            pltpu.VMEM((cb, p + 2 * pad_l), jnp.float32),
        ],
        compiler_params=pltpu.CompilerParams(dimension_semantics=("parallel",)),
        cost_estimate=pl.CostEstimate(flops=int(flops), transcendentals=0,
                                      bytes_accessed=int(bytes_accessed)),
    )(x_flat, w1, s1, b1, w2, s2, b2, ws, ss, bs, masks)

    return y.reshape(n, cout, h, w)            # already NCHW -- no transpose needed


# ----------------------------- reference (pure JAX) --------------------------

def resblock_reference(x_nchw, params):
    """Matched-precision reference: lax convs with bf16 operands, f32 accumulation."""
    x = jnp.transpose(x_nchw, (0, 2, 3, 1))                   # NHWC (reference only)

    def conv(v, w_hwio, pad):
        return lax.conv_general_dilated(
            v.astype(jnp.bfloat16), w_hwio.astype(jnp.bfloat16),
            (1, 1), [(pad, pad), (pad, pad)],
            dimension_numbers=("NHWC", "HWIO", "NHWC"),
            preferred_element_type=jnp.float32)

    h = jnp.maximum(conv(x, params["w1"], 1) * params["s1"] + params["b1"], 0.0)
    m = conv(h, params["w2"], 1) * params["s2"] + params["b2"]
    s = conv(x, params["ws"], 0) * params["ss"] + params["bs"]
    y = jnp.maximum(m + s, 0.0)
    return jnp.transpose(y, (0, 3, 1, 2))


# ----------------------------- params -----------------------------------------

def init_params(key, cin, cb, cout):
    """Synthetic HWIO conv weights + BatchNorm folded to per-channel scale/bias.
    BN uses fresh running stats (mean=0, var=1), i.e. a newly constructed module in
    eval mode; trained stats would be folded the same way."""
    ks = jax.random.split(key, 9)
    eps = 1e-5

    def bn_fold(kg, kb, c):
        gamma = jax.random.uniform(kg, (c,), jnp.float32, 0.5, 1.5)
        beta = 0.1 * jax.random.normal(kb, (c,), jnp.float32)
        running_mean = jnp.zeros((c,), jnp.float32)
        running_var = jnp.ones((c,), jnp.float32)
        scale = gamma / jnp.sqrt(running_var + eps)
        bias = beta - running_mean * scale
        return scale, bias

    w1 = 0.1 * jax.random.normal(ks[0], (3, 3, cin, cb), jnp.float32)
    w2 = 0.1 * jax.random.normal(ks[1], (3, 3, cb, cb), jnp.float32)
    ws = 0.1 * jax.random.normal(ks[2], (1, 1, cin, cout), jnp.float32)
    s1, b1 = bn_fold(ks[3], ks[4], cb)
    s2, b2 = bn_fold(ks[5], ks[6], cb)
    ss, bs = bn_fold(ks[7], ks[8], cout)
    return dict(w1=w1, s1=s1, b1=b1, w2=w2, s2=s2, b2=b2, ws=ws, ss=ss, bs=bs)


# ----------------------------- main -------------------------------------------

if __name__ == "__main__":
    # ResBlock(input_channel=4, block_base_channel=8, output_channel=8,
    #          block=ConvBlock, stride=1, pre_activation=False)
    # -> shortcut is Conv1x1+BN (no activation) since Cin != Cout.
    N, CIN, H, W = 2, 4, 16, 16
    CB, COUT = 8, 8

    key = jax.random.PRNGKey(0)
    kx, kp = jax.random.split(key)
    x = jax.random.normal(kx, (N, CIN, H, W), jnp.float32)    # PyTorch NCHW input
    params = init_params(kp, CIN, CB, COUT)

    out = jax.block_until_ready(jax.jit(resblock_forward)(x, params))
    ref = jax.block_until_ready(resblock_reference(x, params))

    assert out.shape == (N, COUT, H, W)
    max_err = float(jnp.max(jnp.abs(out - ref)))
    assert jnp.allclose(out, ref, rtol=1e-2, atol=1e-2), max_err
    print("KERNEL_OK")
</pallas_src>

<mosaic_0001>
module attributes {stable_mosaic.version = 11 : i64} {
  func.func @resblock_kernel(%arg0: i32, %arg1: memref<1x4x256xbf16, #tpu.memory_space<vmem>>, %arg2: memref<9x8x4xbf16, #tpu.memory_space<vmem>>, %arg3: memref<8x1xf32, #tpu.memory_space<vmem>>, %arg4: memref<8x1xf32, #tpu.memory_space<vmem>>, %arg5: memref<9x8x8xbf16, #tpu.memory_space<vmem>>, %arg6: memref<8x1xf32, #tpu.memory_space<vmem>>, %arg7: memref<8x1xf32, #tpu.memory_space<vmem>>, %arg8: memref<8x4xf32, #tpu.memory_space<vmem>>, %arg9: memref<8x1xf32, #tpu.memory_space<vmem>>, %arg10: memref<8x1xf32, #tpu.memory_space<vmem>>, %arg11: memref<9x256xf32, #tpu.memory_space<vmem>>, %arg12: memref<1x8x256xf32, #tpu.memory_space<vmem>>, %arg13: memref<4x512xf32, #tpu.memory_space<vmem>>, %arg14: memref<8x512xf32, #tpu.memory_space<vmem>>) attributes {dimension_semantics = [#tpu.dimension_semantics<parallel>], iteration_bounds = array<i64: 2>, scalar_prefetch = 0 : i64, scratch_operands = 2 : i64, tpu.core_type = #tpu.core_type<tc>, window_params = [{transform_indices = @transform_0, window_bounds = array<i64: 1, 4, 256>}, {pipeline_mode = #tpu.pipeline_mode<synchronous>, transform_indices = @transform_1, window_bounds = array<i64: 9, 8, 4>}, {pipeline_mode = #tpu.pipeline_mode<synchronous>, transform_indices = @transform_2, window_bounds = array<i64: 8, 1>}, {pipeline_mode = #tpu.pipeline_mode<synchronous>, transform_indices = @transform_3, window_bounds = array<i64: 8, 1>}, {pipeline_mode = #tpu.pipeline_mode<synchronous>, transform_indices = @transform_4, window_bounds = array<i64: 9, 8, 8>}, {pipeline_mode = #tpu.pipeline_mode<synchronous>, transform_indices = @transform_5, window_bounds = array<i64: 8, 1>}, {pipeline_mode = #tpu.pipeline_mode<synchronous>, transform_indices = @transform_6, window_bounds = array<i64: 8, 1>}, {pipeline_mode = #tpu.pipeline_mode<synchronous>, transform_indices = @transform_7, window_bounds = array<i64: 8, 4>}, {pipeline_mode = #tpu.pipeline_mode<synchronous>, transform_indices = @transform_8, window_bounds = array<i64: 8, 1>}, {pipeline_mode = #tpu.pipeline_mode<synchronous>, transform_indices = @transform_9, window_bounds = array<i64: 8, 1>}, {pipeline_mode = #tpu.pipeline_mode<synchronous>, transform_indices = @transform_10, window_bounds = array<i64: 9, 256>}, {transform_indices = @transform_11, window_bounds = array<i64: 1, 8, 256>}]} {
    %c0 = arith.constant 0 : index
    %c0_0 = arith.constant 0 : index
    %0 = vector.load %arg11[%c0, %c0_0] : memref<9x256xf32, #tpu.memory_space<vmem>>, vector<9x256xf32>
    %cst = arith.constant 0.000000e+00 : f32
    %1 = vector.broadcast %cst : f32 to vector<4x512xf32>
    %c0_1 = arith.constant 0 : index
    %c0_2 = arith.constant 0 : index
    %2 = vector.load %arg13[%c0_1, %c0_2] : memref<4x512xf32, #tpu.memory_space<vmem>>, vector<4x512xf32>
    tpu.vector_store %arg13[%c0_1, %c0_2], %1 {strides = array<i32>} : memref<4x512xf32, #tpu.memory_space<vmem>>, vector<4x512xf32>,
    %c0_3 = arith.constant 0 : index
    %c0_4 = arith.constant 0 : index
    %c0_5 = arith.constant 0 : index
    %3 = vector.load %arg1[%c0_3, %c0_4, %c0_5] : memref<1x4x256xbf16, #tpu.memory_space<vmem>>, vector<1x4x256xbf16>
    %4 = vector.shape_cast %3 : vector<1x4x256xbf16> to vector<4x256xbf16>
    %5 = arith.extf %4 : vector<4x256xbf16> to vector<4x256xf32>
    %c0_6 = arith.constant 0 : index
    %c128 = arith.constant 128 : index
    %6 = vector.load %arg13[%c0_6, %c128] : memref<4x512xf32, #tpu.memory_space<vmem>>, vector<4x256xf32>
    tpu.vector_store %arg13[%c0_6, %c128], %5 {strides = array<i32>} : memref<4x512xf32, #tpu.memory_space<vmem>>, vector<4x256xf32>,
    %c0_7 = arith.constant 0 : index
    %c0_8 = arith.constant 0 : index
    %7 = vector.load %arg13[%c0_7, %c0_8] : memref<4x512xf32, #tpu.memory_space<vmem>>, vector<4x512xf32>
    %cst_9 = arith.constant 0.000000e+00 : f32
    %8 = vector.broadcast %cst_9 : f32 to vector<8x256xf32>
    %9 = vector.extract_strided_slice %7 {offsets = [0, 111], sizes = [4, 256], strides = [1, 1]} : vector<4x512xf32> to vector<4x256xf32>
    %10 = vector.extract_strided_slice %0 {offsets = [0, 0], sizes = [1, 256], strides = [1, 1]} : vector<9x256xf32> to vector<1x256xf32>
    %11 = vector.broadcast %10 : vector<1x256xf32> to vector<4x256xf32>
    %12 = arith.mulf %9, %11 : vector<4x256xf32>
    %c0_10 = arith.constant 0 : index
    %c0_11 = arith.constant 0 : index
    %c0_12 = arith.constant 0 : index
    %13 = vector.load %arg2[%c0_10, %c0_11, %c0_12] : memref<9x8x4xbf16, #tpu.memory_space<vmem>>, vector<1x8x4xbf16>
    %14 = vector.shape_cast %13 : vector<1x8x4xbf16> to vector<8x4xbf16>
    %15 = arith.truncf %12 : vector<4x256xf32> to vector<4x256xbf16>
    %cst_13 = arith.constant dense<0.000000e+00> : vector<8x256xf32>
    %16 = tpu.matmul %14, %15, %cst_13 {dimension_numbers = #tpu.dot_dimension_numbers<[1], [0], [0], [1], [0, 0, 1, 1], [], []>} : vector<8x4xbf16>, vector<4x256xbf16>, vector<8x256xf32> -> vector<8x256xf32>
    %17 = arith.addf %8, %16 : vector<8x256xf32>
    %18 = vector.extract_strided_slice %7 {offsets = [0, 112], sizes = [4, 256], strides = [1, 1]} : vector<4x512xf32> to vector<4x256xf32>
    %19 = vector.extract_strided_slice %0 {offsets = [1, 0], sizes = [1, 256], strides = [1, 1]} : vector<9x256xf32> to vector<1x256xf32>
    %20 = vector.broadcast %19 : vector<1x256xf32> to vector<4x256xf32>
    %21 = arith.mulf %18, %20 : vector<4x256xf32>
    %c1 = arith.constant 1 : index
    %c0_14 = arith.constant 0 : index
    %c0_15 = arith.constant 0 : index
    %22 = vector.load %arg2[%c1, %c0_14, %c0_15] : memref<9x8x4xbf16, #tpu.memory_space<vmem>>, vector<1x8x4xbf16>
    %23 = vector.shape_cast %22 : vector<1x8x4xbf16> to vector<8x4xbf16>
    %24 = arith.truncf %21 : vector<4x256xf32> to vector<4x256xbf16>
    %cst_16 = arith.constant dense<0.000000e+00> : vector<8x256xf32>
    %25 = tpu.matmul %23, %24, %cst_16 {dimension_numbers = #tpu.dot_dimension_numbers<[1], [0], [0], [1], [0, 0, 1, 1], [], []>} : vector<8x4xbf16>, vector<4x256xbf16>, vector<8x256xf32> -> vector<8x256xf32>
    %26 = arith.addf %17, %25 : vector<8x256xf32>
    %27 = vector.extract_strided_slice %7 {offsets = [0, 113], sizes = [4, 256], strides = [1, 1]} : vector<4x512xf32> to vector<4x256xf32>
    %28 = vector.extract_strided_slice %0 {offsets = [2, 0], sizes = [1, 256], strides = [1, 1]} : vector<9x256xf32> to vector<1x256xf32>
    %29 = vector.broadcast %28 : vector<1x256xf32> to vector<4x256xf32>
    %30 = arith.mulf %27, %29 : vector<4x256xf32>
    %c2 = arith.constant 2 : index
    %c0_17 = arith.constant 0 : index
    %c0_18 = arith.constant 0 : index
    %31 = vector.load %arg2[%c2, %c0_17, %c0_18] : memref<9x8x4xbf16, #tpu.memory_space<vmem>>, vector<1x8x4xbf16>
    %32 = vector.shape_cast %31 : vector<1x8x4xbf16> to vector<8x4xbf16>
    %33 = arith.truncf %30 : vector<4x256xf32> to vector<4x256xbf16>
    %cst_19 = arith.constant dense<0.000000e+00> : vector<8x256xf32>
    %34 = tpu.matmul %32, %33, %cst_19 {dimension_numbers = #tpu.dot_dimension_numbers<[1], [0], [0], [1], [0, 0, 1, 1], [], []>} : vector<8x4xbf16>, vector<4x256xbf16>, vector<8x256xf32> -> vector<8x256xf32>
    %35 = arith.addf %26, %34 : vector<8x256xf32>
    %36 = vector.extract_strided_slice %7 {offsets = [0, 127], sizes = [4, 256], strides = [1, 1]} : vector<4x512xf32> to vector<4x256xf32>
    %37 = vector.extract_strided_slice %0 {offsets = [3, 0], sizes = [1, 256], strides = [1, 1]} : vector<9x256xf32> to vector<1x256xf32>
    %38 = vector.broadcast %37 : vector<1x256xf32> to vector<4x256xf32>
    %39 = arith.mulf %36, %38 : vector<4x256xf32>
    %c3 = arith.constant 3 : index
    %c0_20 = arith.constant 0 : index
    %c0_21 = arith.constant 0 : index
    %40 = vector.load %arg2[%c3, %c0_20, %c0_21] : memref<9x8x4xbf16, #tpu.memory_space<vmem>>, vector<1x8x4xbf16>
    %41 = vector.shape_cast %40 : vector<1x8x4xbf16> to vector<8x4xbf16>
    %42 = arith.truncf %39 : vector<4x256xf32> to vector<4x256xbf16>
    %cst_22 = arith.constant dense<0.000000e+00> : vector<8x256xf32>
    %43 = tpu.matmul %41, %42, %cst_22 {dimension_numbers = #tpu.dot_dimension_numbers<[1], [0], [0], [1], [0, 0, 1, 1], [], []>} : vector<8x4xbf16>, vector<4x256xbf16>, vector<8x256xf32> -> vector<8x256xf32>
    %44 = arith.addf %35, %43 : vector<8x256xf32>
    %45 = vector.extract_strided_slice %7 {offsets = [0, 128], sizes = [4, 256], strides = [1, 1]} : vector<4x512xf32> to vector<4x256xf32>
    %46 = vector.extract_strided_slice %0 {offsets = [4, 0], sizes = [1, 256], strides = [1, 1]} : vector<9x256xf32> to vector<1x256xf32>
    %47 = vector.broadcast %46 : vector<1x256xf32> to vector<4x256xf32>
    %48 = arith.mulf %45, %47 : vector<4x256xf32>
    %c4 = arith.constant 4 : index
    %c0_23 = arith.constant 0 : index
    %c0_24 = arith.constant 0 : index
    %49 = vector.load %arg2[%c4, %c0_23, %c0_24] : memref<9x8x4xbf16, #tpu.memory_space<vmem>>, vector<1x8x4xbf16>
    %50 = vector.shape_cast %49 : vector<1x8x4xbf16> to vector<8x4xbf16>
    %51 = arith.truncf %48 : vector<4x256xf32> to vector<4x256xbf16>
    %cst_25 = arith.constant dense<0.000000e+00> : vector<8x256xf32>
    %52 = tpu.matmul %50, %51, %cst_25 {dimension_numbers = #tpu.dot_dimension_numbers<[1], [0], [0], [1], [0, 0, 1, 1], [], []>} : vector<8x4xbf16>, vector<4x256xbf16>, vector<8x256xf32> -> vector<8x256xf32>
    %53 = arith.addf %44, %52 : vector<8x256xf32>
    %54 = vector.extract_strided_slice %7 {offsets = [0, 129], sizes = [4, 256], strides = [1, 1]} : vector<4x512xf32> to vector<4x256xf32>
    %55 = vector.extract_strided_slice %0 {offsets = [5, 0], sizes = [1, 256], strides = [1, 1]} : vector<9x256xf32> to vector<1x256xf32>
    %56 = vector.broadcast %55 : vector<1x256xf32> to vector<4x256xf32>
    %57 = arith.mulf %54, %56 : vector<4x256xf32>
    %c5 = arith.constant 5 : index
    %c0_26 = arith.constant 0 : index
    %c0_27 = arith.constant 0 : index
    %58 = vector.load %arg2[%c5, %c0_26, %c0_27] : memref<9x8x4xbf16, #tpu.memory_space<vmem>>, vector<1x8x4xbf16>
    %59 = vector.shape_cast %58 : vector<1x8x4xbf16> to vector<8x4xbf16>
    %60 = arith.truncf %57 : vector<4x256xf32> to vector<4x256xbf16>
    %cst_28 = arith.constant dense<0.000000e+00> : vector<8x256xf32>
    %61 = tpu.matmul %59, %60, %cst_28 {dimension_numbers = #tpu.dot_dimension_numbers<[1], [0], [0], [1], [0, 0, 1, 1], [], []>} : vector<8x4xbf16>, vector<4x256xbf16>, vector<8x256xf32> -> vector<8x256xf32>
    %62 = arith.addf %53, %61 : vector<8x256xf32>
    %63 = vector.extract_strided_slice %7 {offsets = [0, 143], sizes = [4, 256], strides = [1, 1]} : vector<4x512xf32> to vector<4x256xf32>
    %64 = vector.extract_strided_slice %0 {offsets = [6, 0], sizes = [1, 256], strides = [1, 1]} : vector<9x256xf32> to vector<1x256xf32>
    %65 = vector.broadcast %64 : vector<1x256xf32> to vector<4x256xf32>
    %66 = arith.mulf %63, %65 : vector<4x256xf32>
    %c6 = arith.constant 6 : index
    %c0_29 = arith.constant 0 : index
    %c0_30 = arith.constant 0 : index
    %67 = vector.load %arg2[%c6, %c0_29, %c0_30] : memref<9x8x4xbf16, #tpu.memory_space<vmem>>, vector<1x8x4xbf16>
    %68 = vector.shape_cast %67 : vector<1x8x4xbf16> to vector<8x4xbf16>
    %69 = arith.truncf %66 : vector<4x256xf32> to vector<4x256xbf16>
    %cst_31 = arith.constant dense<0.000000e+00> : vector<8x256xf32>
    %70 = tpu.matmul %68, %69, %cst_31 {dimension_numbers = #tpu.dot_dimension_numbers<[1], [0], [0], [1], [0, 0, 1, 1], [], []>} : vector<8x4xbf16>, vector<4x256xbf16>, vector<8x256xf32> -> vector<8x256xf32>
    %71 = arith.addf %62, %70 : vector<8x256xf32>
    %72 = vector.extract_strided_slice %7 {offsets = [0, 144], sizes = [4, 256], strides = [1, 1]} : vector<4x512xf32> to vector<4x256xf32>
    %73 = vector.extract_strided_slice %0 {offsets = [7, 0], sizes = [1, 256], strides = [1, 1]} : vector<9x256xf32> to vector<1x256xf32>
    %74 = vector.broadcast %73 : vector<1x256xf32> to vector<4x256xf32>
    %75 = arith.mulf %72, %74 : vector<4x256xf32>
    %c7 = arith.constant 7 : index
    %c0_32 = arith.constant 0 : index
    %c0_33 = arith.constant 0 : index
    %76 = vector.load %arg2[%c7, %c0_32, %c0_33] : memref<9x8x4xbf16, #tpu.memory_space<vmem>>, vector<1x8x4xbf16>
    %77 = vector.shape_cast %76 : vector<1x8x4xbf16> to vector<8x4xbf16>
    %78 = arith.truncf %75 : vector<4x256xf32> to vector<4x256xbf16>
    %cst_34 = arith.constant dense<0.000000e+00> : vector<8x256xf32>
    %79 = tpu.matmul %77, %78, %cst_34 {dimension_numbers = #tpu.dot_dimension_numbers<[1], [0], [0], [1], [0, 0, 1, 1], [], []>} : vector<8x4xbf16>, vector<4x256xbf16>, vector<8x256xf32> -> vector<8x256xf32>
    %80 = arith.addf %71, %79 : vector<8x256xf32>
    %81 = vector.extract_strided_slice %7 {offsets = [0, 145], sizes = [4, 256], strides = [1, 1]} : vector<4x512xf32> to vector<4x256xf32>
    %82 = vector.extract_strided_slice %0 {offsets = [8, 0], sizes = [1, 256], strides = [1, 1]} : vector<9x256xf32> to vector<1x256xf32>
    %83 = vector.broadcast %82 : vector<1x256xf32> to vector<4x256xf32>
    %84 = arith.mulf %81, %83 : vector<4x256xf32>
    %c8 = arith.constant 8 : index
    %c0_35 = arith.constant 0 : index
    %c0_36 = arith.constant 0 : index
    %85 = vector.load %arg2[%c8, %c0_35, %c0_36] : memref<9x8x4xbf16, #tpu.memory_space<vmem>>, vector<1x8x4xbf16>
    %86 = vector.shape_cast %85 : vector<1x8x4xbf16> to vector<8x4xbf16>
    %87 = arith.truncf %84 : vector<4x256xf32> to vector<4x256xbf16>
    %cst_37 = arith.constant dense<0.000000e+00> : vector<8x256xf32>
    %88 = tpu.matmul %86, %87, %cst_37 {dimension_numbers = #tpu.dot_dimension_numbers<[1], [0], [0], [1], [0, 0, 1, 1], [], []>} : vector<8x4xbf16>, vector<4x256xbf16>, vector<8x256xf32> -> vector<8x256xf32>
    %89 = arith.addf %80, %88 : vector<8x256xf32>
    %c0_38 = arith.constant 0 : index
    %c0_39 = arith.constant 0 : index
    %90 = vector.load %arg3[%c0_38, %c0_39] : memref<8x1xf32, #tpu.memory_space<vmem>>, vector<8x1xf32>
    %91 = vector.broadcast %90 : vector<8x1xf32> to vector<8x256xf32>
    %92 = arith.mulf %89, %91 : vector<8x256xf32>
    %c0_40 = arith.constant 0 : index
    %c0_41 = arith.constant 0 : index
    %93 = vector.load %arg4[%c0_40, %c0_41] : memref<8x1xf32, #tpu.memory_space<vmem>>, vector<8x1xf32>
    %94 = vector.broadcast %93 : vector<8x1xf32> to vector<8x256xf32>
    %95 = arith.addf %92, %94 : vector<8x256xf32>
    %cst_42 = arith.constant 0.000000e+00 : f32
    %96 = vector.broadcast %cst_42 : f32 to vector<8x256xf32>
    %97 = arith.maximumf %95, %96 : vector<8x256xf32>
    %cst_43 = arith.constant 0.000000e+00 : f32
    %98 = vector.broadcast %cst_43 : f32 to vector<8x512xf32>
    %c0_44 = arith.constant 0 : index
    %c0_45 = arith.constant 0 : index
    %99 = vector.load %arg14[%c0_44, %c0_45] : memref<8x512xf32, #tpu.memory_space<vmem>>, vector<8x512xf32>
    tpu.vector_store %arg14[%c0_44, %c0_45], %98 {strides = array<i32>} : memref<8x512xf32, #tpu.memory_space<vmem>>, vector<8x512xf32>,
    %c0_46 = arith.constant 0 : index
    %c128_47 = arith.constant 128 : index
    %100 = vector.load %arg14[%c0_46, %c128_47] : memref<8x512xf32, #tpu.memory_space<vmem>>, vector<8x256xf32>
    tpu.vector_store %arg14[%c0_46, %c128_47], %97 {strides = array<i32>} : memref<8x512xf32, #tpu.memory_space<vmem>>, vector<8x256xf32>,
    %c0_48 = arith.constant 0 : index
    %c0_49 = arith.constant 0 : index
    %101 = vector.load %arg14[%c0_48, %c0_49] : memref<8x512xf32, #tpu.memory_space<vmem>>, vector<8x512xf32>
    %cst_50 = arith.constant 0.000000e+00 : f32
    %102 = vector.broadcast %cst_50 : f32 to vector<8x256xf32>
    %103 = vector.extract_strided_slice %101 {offsets = [0, 111], sizes = [8, 256], strides = [1, 1]} : vector<8x512xf32> to vector<8x256xf32>
    %104 = vector.extract_strided_slice %0 {offsets = [0, 0], sizes = [1, 256], strides = [1, 1]} : vector<9x256xf32> to vector<1x256xf32>
    %105 = vector.broadcast %104 : vector<1x256xf32> to vector<8x256xf32>
    %106 = arith.mulf %103, %105 : vector<8x256xf32>
    %c0_51 = arith.constant 0 : index
    %c0_52 = arith.constant 0 : index
    %c0_53 = arith.constant 0 : index
    %107 = vector.load %arg5[%c0_51, %c0_52, %c0_53] : memref<9x8x8xbf16, #tpu.memory_space<vmem>>, vector<1x8x8xbf16>
    %108 = vector.shape_cast %107 : vector<1x8x8xbf16> to vector<8x8xbf16>
    %109 = arith.truncf %106 : vector<8x256xf32> to vector<8x256xbf16>
    %cst_54 = arith.constant dense<0.000000e+00> : vector<8x256xf32>
    %110 = tpu.matmul %108, %109, %cst_54 {dimension_numbers = #tpu.dot_dimension_numbers<[1], [0], [0], [1], [0, 0, 1, 1], [], []>} : vector<8x8xbf16>, vector<8x256xbf16>, vector<8x256xf32> -> vector<8x256xf32>
    %111 = arith.addf %102, %110 : vector<8x256xf32>
    %112 = vector.extract_strided_slice %101 {offsets = [0, 112], sizes = [8, 256], strides = [1, 1]} : vector<8x512xf32> to vector<8x256xf32>
    %113 = vector.extract_strided_slice %0 {offsets = [1, 0], sizes = [1, 256], strides = [1, 1]} : vector<9x256xf32> to vector<1x256xf32>
    %114 = vector.broadcast %113 : vector<1x256xf32> to vector<8x256xf32>
    %115 = arith.mulf %112, %114 : vector<8x256xf32>
    %c1_55 = arith.constant 1 : index
    %c0_56 = arith.constant 0 : index
    %c0_57 = arith.constant 0 : index
    %116 = vector.load %arg5[%c1_55, %c0_56, %c0_57] : memref<9x8x8xbf16, #tpu.memory_space<vmem>>, vector<1x8x8xbf16>
    %117 = vector.shape_cast %116 : vector<1x8x8xbf16> to vector<8x8xbf16>
    %118 = arith.truncf %115 : vector<8x256xf32> to vector<8x256xbf16>
    %cst_58 = arith.constant dense<0.000000e+00> : vector<8x256xf32>
    %119 = tpu.matmul %117, %118, %cst_58 {dimension_numbers = #tpu.dot_dimension_numbers<[1], [0], [0], [1], [0, 0, 1, 1], [], []>} : vector<8x8xbf16>, vector<8x256xbf16>, vector<8x256xf32> -> vector<8x256xf32>
    %120 = arith.addf %111, %119 : vector<8x256xf32>
    %121 = vector.extract_strided_slice %101 {offsets = [0, 113], sizes = [8, 256], strides = [1, 1]} : vector<8x512xf32> to vector<8x256xf32>
    %122 = vector.extract_strided_slice %0 {offsets = [2, 0], sizes = [1, 256], strides = [1, 1]} : vector<9x256xf32> to vector<1x256xf32>
    %123 = vector.broadcast %122 : vector<1x256xf32> to vector<8x256xf32>
    %124 = arith.mulf %121, %123 : vector<8x256xf32>
    %c2_59 = arith.constant 2 : index
    %c0_60 = arith.constant 0 : index
    %c0_61 = arith.constant 0 : index
    %125 = vector.load %arg5[%c2_59, %c0_60, %c0_61] : memref<9x8x8xbf16, #tpu.memory_space<vmem>>, vector<1x8x8xbf16>
    %126 = vector.shape_cast %125 : vector<1x8x8xbf16> to vector<8x8xbf16>
    %127 = arith.truncf %124 : vector<8x256xf32> to vector<8x256xbf16>
    %cst_62 = arith.constant dense<0.000000e+00> : vector<8x256xf32>
    %128 = tpu.matmul %126, %127, %cst_62 {dimension_numbers = #tpu.dot_dimension_numbers<[1], [0], [0], [1], [0, 0, 1, 1], [], []>} : vector<8x8xbf16>, vector<8x256xbf16>, vector<8x256xf32> -> vector<8x256xf32>
    %129 = arith.addf %120, %128 : vector<8x256xf32>
    %130 = vector.extract_strided_slice %101 {offsets = [0, 127], sizes = [8, 256], strides = [1, 1]} : vector<8x512xf32> to vector<8x256xf32>
    %131 = vector.extract_strided_slice %0 {offsets = [3, 0], sizes = [1, 256], strides = [1, 1]} : vector<9x256xf32> to vector<1x256xf32>
    %132 = vector.broadcast %131 : vector<1x256xf32> to vector<8x256xf32>
    %133 = arith.mulf %130, %132 : vector<8x256xf32>
    %c3_63 = arith.constant 3 : index
    %c0_64 = arith.constant 0 : index
    %c0_65 = arith.constant 0 : index
    %134 = vector.load %arg5[%c3_63, %c0_64, %c0_65] : memref<9x8x8xbf16, #tpu.memory_space<vmem>>, vector<1x8x8xbf16>
    %135 = vector.shape_cast %134 : vector<1x8x8xbf16> to vector<8x8xbf16>
    %136 = arith.truncf %133 : vector<8x256xf32> to vector<8x256xbf16>
    %cst_66 = arith.constant dense<0.000000e+00> : vector<8x256xf32>
    %137 = tpu.matmul %135, %136, %cst_66 {dimension_numbers = #tpu.dot_dimension_numbers<[1], [0], [0], [1], [0, 0, 1, 1], [], []>} : vector<8x8xbf16>, vector<8x256xbf16>, vector<8x256xf32> -> vector<8x256xf32>
    %138 = arith.addf %129, %137 : vector<8x256xf32>
    %139 = vector.extract_strided_slice %101 {offsets = [0, 128], sizes = [8, 256], strides = [1, 1]} : vector<8x512xf32> to vector<8x256xf32>
    %140 = vector.extract_strided_slice %0 {offsets = [4, 0], sizes = [1, 256], strides = [1, 1]} : vector<9x256xf32> to vector<1x256xf32>
    %141 = vector.broadcast %140 : vector<1x256xf32> to vector<8x256xf32>
    %142 = arith.mulf %139, %141 : vector<8x256xf32>
    %c4_67 = arith.constant 4 : index
    %c0_68 = arith.constant 0 : index
    %c0_69 = arith.constant 0 : index
    %143 = vector.load %arg5[%c4_67, %c0_68, %c0_69] : memref<9x8x8xbf16, #tpu.memory_space<vmem>>, vector<1x8x8xbf16>
    %144 = vector.shape_cast %143 : vector<1x8x8xbf16> to vector<8x8xbf16>
    %145 = arith.truncf %142 : vector<8x256xf32> to vector<8x256xbf16>
    %cst_70 = arith.constant dense<0.000000e+00> : vector<8x256xf32>
    %146 = tpu.matmul %144, %145, %cst_70 {dimension_numbers = #tpu.dot_dimension_numbers<[1], [0], [0], [1], [0, 0, 1, 1], [], []>} : vector<8x8xbf16>, vector<8x256xbf16>, vector<8x256xf32> -> vector<8x256xf32>
    %147 = arith.addf %138, %146 : vector<8x256xf32>
    %148 = vector.extract_strided_slice %101 {offsets = [0, 129], sizes = [8, 256], strides = [1, 1]} : vector<8x512xf32> to vector<8x256xf32>
    %149 = vector.extract_strided_slice %0 {offsets = [5, 0], sizes = [1, 256], strides = [1, 1]} : vector<9x256xf32> to vector<1x256xf32>
    %150 = vector.broadcast %149 : vector<1x256xf32> to vector<8x256xf32>
    %151 = arith.mulf %148, %150 : vector<8x256xf32>
    %c5_71 = arith.constant 5 : index
    %c0_72 = arith.constant 0 : index
    %c0_73 = arith.constant 0 : index
    %152 = vector.load %arg5[%c5_71, %c0_72, %c0_73] : memref<9x8x8xbf16, #tpu.memory_space<vmem>>, vector<1x8x8xbf16>
    %153 = vector.shape_cast %152 : vector<1x8x8xbf16> to vector<8x8xbf16>
    %154 = arith.truncf %151 : vector<8x256xf32> to vector<8x256xbf16>
    %cst_74 = arith.constant dense<0.000000e+00> : vector<8x256xf32>
    %155 = tpu.matmul %153, %154, %cst_74 {dimension_numbers = #tpu.dot_dimension_numbers<[1], [0], [0], [1], [0, 0, 1, 1], [], []>} : vector<8x8xbf16>, vector<8x256xbf16>, vector<8x256xf32> -> vector<8x256xf32>
    %156 = arith.addf %147, %155 : vector<8x256xf32>
    %157 = vector.extract_strided_slice %101 {offsets = [0, 143], sizes = [8, 256], strides = [1, 1]} : vector<8x512xf32> to vector<8x256xf32>
    %158 = vector.extract_strided_slice %0 {offsets = [6, 0], sizes = [1, 256], strides = [1, 1]} : vector<9x256xf32> to vector<1x256xf32>
    %159 = vector.broadcast %158 : vector<1x256xf32> to vector<8x256xf32>
    %160 = arith.mulf %157, %159 : vector<8x256xf32>
    %c6_75 = arith.constant 6 : index
    %c0_76 = arith.constant 0 : index
    %c0_77 = arith.constant 0 : index
    %161 = vector.load %arg5[%c6_75, %c0_76, %c0_77] : memref<9x8x8xbf16, #tpu.memory_space<vmem>>, vector<1x8x8xbf16>
    %162 = vector.shape_cast %161 : vector<1x8x8xbf16> to vector<8x8xbf16>
    %163 = arith.truncf %160 : vector<8x256xf32> to vector<8x256xbf16>
    %cst_78 = arith.constant dense<0.000000e+00> : vector<8x256xf32>
    %164 = tpu.matmul %162, %163, %cst_78 {dimension_numbers = #tpu.dot_dimension_numbers<[1], [0], [0], [1], [0, 0, 1, 1], [], []>} : vector<8x8xbf16>, vector<8x256xbf16>, vector<8x256xf32> -> vector<8x256xf32>
    %165 = arith.addf %156, %164 : vector<8x256xf32>
    %166 = vector.extract_strided_slice %101 {offsets = [0, 144], sizes = [8, 256], strides = [1, 1]} : vector<8x512xf32> to vector<8x256xf32>
    %167 = vector.extract_strided_slice %0 {offsets = [7, 0], sizes = [1, 256], strides = [1, 1]} : vector<9x256xf32> to vector<1x256xf32>
    %168 = vector.broadcast %167 : vector<1x256xf32> to vector<8x256xf32>
    %169 = arith.mulf %166, %168 : vector<8x256xf32>
    %c7_79 = arith.constant 7 : index
    %c0_80 = arith.constant 0 : index
    %c0_81 = arith.constant 0 : index
    %170 = vector.load %arg5[%c7_79, %c0_80, %c0_81] : memref<9x8x8xbf16, #tpu.memory_space<vmem>>, vector<1x8x8xbf16>
    %171 = vector.shape_cast %170 : vector<1x8x8xbf16> to vector<8x8xbf16>
    %172 = arith.truncf %169 : vector<8x256xf32> to vector<8x256xbf16>
    %cst_82 = arith.constant dense<0.000000e+00> : vector<8x256xf32>
    %173 = tpu.matmul %171, %172, %cst_82 {dimension_numbers = #tpu.dot_dimension_numbers<[1], [0], [0], [1], [0, 0, 1, 1], [], []>} : vector<8x8xbf16>, vector<8x256xbf16>, vector<8x256xf32> -> vector<8x256xf32>
    %174 = arith.addf %165, %173 : vector<8x256xf32>
    %175 = vector.extract_strided_slice %101 {offsets = [0, 145], sizes = [8, 256], strides = [1, 1]} : vector<8x512xf32> to vector<8x256xf32>
    %176 = vector.extract_strided_slice %0 {offsets = [8, 0], sizes = [1, 256], strides = [1, 1]} : vector<9x256xf32> to vector<1x256xf32>
    %177 = vector.broadcast %176 : vector<1x256xf32> to vector<8x256xf32>
    %178 = arith.mulf %175, %177 : vector<8x256xf32>
    %c8_83 = arith.constant 8 : index
    %c0_84 = arith.constant 0 : index
    %c0_85 = arith.constant 0 : index
    %179 = vector.load %arg5[%c8_83, %c0_84, %c0_85] : memref<9x8x8xbf16, #tpu.memory_space<vmem>>, vector<1x8x8xbf16>
    %180 = vector.shape_cast %179 : vector<1x8x8xbf16> to vector<8x8xbf16>
    %181 = arith.truncf %178 : vector<8x256xf32> to vector<8x256xbf16>
    %cst_86 = arith.constant dense<0.000000e+00> : vector<8x256xf32>
    %182 = tpu.matmul %180, %181, %cst_86 {dimension_numbers = #tpu.dot_dimension_numbers<[1], [0], [0], [1], [0, 0, 1, 1], [], []>} : vector<8x8xbf16>, vector<8x256xbf16>, vector<8x256xf32> -> vector<8x256xf32>
    %183 = arith.addf %174, %182 : vector<8x256xf32>
    %c0_87 = arith.constant 0 : index
    %c0_88 = arith.constant 0 : index
    %184 = vector.load %arg6[%c0_87, %c0_88] : memref<8x1xf32, #tpu.memory_space<vmem>>, vector<8x1xf32>
    %185 = vector.broadcast %184 : vector<8x1xf32> to vector<8x256xf32>
    %186 = arith.mulf %183, %185 : vector<8x256xf32>
    %c0_89 = arith.constant 0 : index
    %c0_90 = arith.constant 0 : index
    %187 = vector.load %arg7[%c0_89, %c0_90] : memref<8x1xf32, #tpu.memory_space<vmem>>, vector<8x1xf32>
    %188 = vector.broadcast %187 : vector<8x1xf32> to vector<8x256xf32>
    %189 = arith.addf %186, %188 : vector<8x256xf32>
    %c0_91 = arith.constant 0 : index
    %c0_92 = arith.constant 0 : index
    %c0_93 = arith.constant 0 : index
    %190 = vector.load %arg1[%c0_91, %c0_92, %c0_93] : memref<1x4x256xbf16, #tpu.memory_space<vmem>>, vector<1x4x256xbf16>
    %191 = vector.shape_cast %190 : vector<1x4x256xbf16> to vector<4x256xbf16>
    %192 = arith.extf %191 : vector<4x256xbf16> to vector<4x256xf32>
    %cst_94 = arith.constant 0.000000e+00 : f32
    %193 = vector.broadcast %cst_94 : f32 to vector<8x256xf32>
    %c0_95 = arith.constant 0 : index
    %c0_96 = arith.constant 0 : index
    %194 = vector.load %arg8[%c0_95, %c0_96] : memref<8x4xf32, #tpu.memory_space<vmem>>, vector<8x1xf32>
    %195 = vector.extract_strided_slice %192 {offsets = [0, 0], sizes = [1, 256], strides = [1, 1]} : vector<4x256xf32> to vector<1x256xf32>
    %196 = vector.broadcast %194 : vector<8x1xf32> to vector<8x256xf32>
    %197 = vector.broadcast %195 : vector<1x256xf32> to vector<8x256xf32>
    %198 = arith.mulf %196, %197 : vector<8x256xf32>
    %199 = arith.addf %193, %198 : vector<8x256xf32>
    %c0_97 = arith.constant 0 : index
    %c1_98 = arith.constant 1 : index
    %200 = vector.load %arg8[%c0_97, %c1_98] : memref<8x4xf32, #tpu.memory_space<vmem>>, vector<8x1xf32>
    %201 = vector.extract_strided_slice %192 {offsets = [1, 0], sizes = [1, 256], strides = [1, 1]} : vector<4x256xf32> to vector<1x256xf32>
    %202 = vector.broadcast %200 : vector<8x1xf32> to vector<8x256xf32>
    %203 = vector.broadcast %201 : vector<1x256xf32> to vector<8x256xf32>
    %204 = arith.mulf %202, %203 : vector<8x256xf32>
    %205 = arith.addf %199, %204 : vector<8x256xf32>
    %c0_99 = arith.constant 0 : index
    %c2_100 = arith.constant 2 : index
    %206 = vector.load %arg8[%c0_99, %c2_100] : memref<8x4xf32, #tpu.memory_space<vmem>>, vector<8x1xf32>
    %207 = vector.extract_strided_slice %192 {offsets = [2, 0], sizes = [1, 256], strides = [1, 1]} : vector<4x256xf32> to vector<1x256xf32>
    %208 = vector.broadcast %206 : vector<8x1xf32> to vector<8x256xf32>
    %209 = vector.broadcast %207 : vector<1x256xf32> to vector<8x256xf32>
    %210 = arith.mulf %208, %209 : vector<8x256xf32>
    %211 = arith.addf %205, %210 : vector<8x256xf32>
    %c0_101 = arith.constant 0 : index
    %c3_102 = arith.constant 3 : index
    %212 = vector.load %arg8[%c0_101, %c3_102] : memref<8x4xf32, #tpu.memory_space<vmem>>, vector<8x1xf32>
    %213 = vector.extract_strided_slice %192 {offsets = [3, 0], sizes = [1, 256], strides = [1, 1]} : vector<4x256xf32> to vector<1x256xf32>
    %214 = vector.broadcast %212 : vector<8x1xf32> to vector<8x256xf32>
    %215 = vector.broadcast %213 : vector<1x256xf32> to vector<8x256xf32>
    %216 = arith.mulf %214, %215 : vector<8x256xf32>
    %217 = arith.addf %211, %216 : vector<8x256xf32>
    %c0_103 = arith.constant 0 : index
    %c0_104 = arith.constant 0 : index
    %218 = vector.load %arg9[%c0_103, %c0_104] : memref<8x1xf32, #tpu.memory_space<vmem>>, vector<8x1xf32>
    %219 = vector.broadcast %218 : vector<8x1xf32> to vector<8x256xf32>
    %220 = arith.mulf %217, %219 : vector<8x256xf32>
    %c0_105 = arith.constant 0 : index
    %c0_106 = arith.constant 0 : index
    %221 = vector.load %arg10[%c0_105, %c0_106] : memref<8x1xf32, #tpu.memory_space<vmem>>, vector<8x1xf32>
    %222 = vector.broadcast %221 : vector<8x1xf32> to vector<8x256xf32>
    %223 = arith.addf %220, %222 : vector<8x256xf32>
    %224 = arith.addf %189, %223 : vector<8x256xf32>
    %cst_107 = arith.constant 0.000000e+00 : f32
    %225 = vector.broadcast %cst_107 : f32 to vector<8x256xf32>
    %226 = arith.maximumf %224, %225 : vector<8x256xf32>
    %c0_108 = arith.constant 0 : index
    %c0_109 = arith.constant 0 : index
    %c0_110 = arith.constant 0 : index
    %227 = vector.load %arg12[%c0_108, %c0_109, %c0_110] : memref<1x8x256xf32, #tpu.memory_space<vmem>>, vector<1x8x256xf32>
    %228 = vector.shape_cast %227 : vector<1x8x256xf32> to vector<8x256xf32>
    %229 = vector.shape_cast %226 : vector<8x256xf32> to vector<1x8x256xf32>
    tpu.vector_store %arg12[%c0_108, %c0_109, %c0_110], %229 {strides = array<i32>} : memref<1x8x256xf32, #tpu.memory_space<vmem>>, vector<1x8x256xf32>,
    return
  }
  func.func @transform_0(%arg0: i32) -> (i32, i32, i32) {
    %c0_i32 = arith.constant 0 : i32
    %c0_i32_0 = arith.constant 0 : i32
    %c0_i32_1 = arith.constant 0 : i32
    return %arg0, %c0_i32, %c0_i32_0 : i32, i32, i32
  }
  func.func @transform_1(%arg0: i32) -> (i32, i32, i32) {
    %c0_i32 = arith.constant 0 : i32
    %c0_i32_0 = arith.constant 0 : i32
    %c0_i32_1 = arith.constant 0 : i32
    %c0_i32_2 = arith.constant 0 : i32
    return %c0_i32, %c0_i32_0, %c0_i32_1 : i32, i32, i32
  }
  func.func @transform_2(%arg0: i32) -> (i32, i32) {
    %c0_i32 = arith.constant 0 : i32
    %c0_i32_0 = arith.constant 0 : i32
    %c0_i32_1 = arith.constant 0 : i32
    return %c0_i32, %c0_i32_0 : i32, i32
  }
  func.func @transform_3(%arg0: i32) -> (i32, i32) {
    %c0_i32 = arith.constant 0 : i32
    %c0_i32_0 = arith.constant 0 : i32
    %c0_i32_1 = arith.constant 0 : i32
    return %c0_i32, %c0_i32_0 : i32, i32
  }
  func.func @transform_4(%arg0: i32) -> (i32, i32, i32) {
    %c0_i32 = arith.constant 0 : i32
    %c0_i32_0 = arith.constant 0 : i32
    %c0_i32_1 = arith.constant 0 : i32
    %c0_i32_2 = arith.constant 0 : i32
    return %c0_i32, %c0_i32_0, %c0_i32_1 : i32, i32, i32
  }
  func.func @transform_5(%arg0: i32) -> (i32, i32) {
    %c0_i32 = arith.constant 0 : i32
    %c0_i32_0 = arith.constant 0 : i32
    %c0_i32_1 = arith.constant 0 : i32
    return %c0_i32, %c0_i32_0 : i32, i32
  }
  func.func @transform_6(%arg0: i32) -> (i32, i32) {
    %c0_i32 = arith.constant 0 : i32
    %c0_i32_0 = arith.constant 0 : i32
    %c0_i32_1 = arith.constant 0 : i32
    return %c0_i32, %c0_i32_0 : i32, i32
  }
  func.func @transform_7(%arg0: i32) -> (i32, i32) {
    %c0_i32 = arith.constant 0 : i32
    %c0_i32_0 = arith.constant 0 : i32
    %c0_i32_1 = arith.constant 0 : i32
    return %c0_i32, %c0_i32_0 : i32, i32
  }
  func.func @transform_8(%arg0: i32) -> (i32, i32) {
    %c0_i32 = arith.constant 0 : i32
    %c0_i32_0 = arith.constant 0 : i32
    %c0_i32_1 = arith.constant 0 : i32
    return %c0_i32, %c0_i32_0 : i32, i32
  }
  func.func @transform_9(%arg0: i32) -> (i32, i32) {
    %c0_i32 = arith.constant 0 : i32
    %c0_i32_0 = arith.constant 0 : i32
    %c0_i32_1 = arith.constant 0 : i32
    return %c0_i32, %c0_i32_0 : i32, i32
  }
  func.func @transform_10(%arg0: i32) -> (i32, i32) {
    %c0_i32 = arith.constant 0 : i32
    %c0_i32_0 = arith.constant 0 : i32
    %c0_i32_1 = arith.constant 0 : i32
    return %c0_i32, %c0_i32_0 : i32, i32
  }
  func.func @transform_11(%arg0: i32) -> (i32, i32, i32) {
    %c0_i32 = arith.constant 0 : i32
    %c0_i32_0 = arith.constant 0 : i32
    %c0_i32_1 = arith.constant 0 : i32
    return %arg0, %c0_i32, %c0_i32_0 : i32, i32, i32
  }
}

</mosaic_0001>

<bundles_post_ra>
// kernel: resblock_forward.1
= control target key start
LH: loop header
LB: loop body
LE: loop exit
PB: predicated region body
PF: predicated region fallthrough
CT: control target
= control target key end

     0   :  { %s2287_s17 = smov 0   ;;  %s2800_s0 = inlined_call_operand.vmem [shape: bf16[2,4,256], index: 0, kind: input, shape index: {}]   ;;  %s2801_s1 = inlined_call_operand.vmem [shape: bf16[9,8,4], index: 1, kind: input, shape index: {}]   ;;  %s2802_s2 = inlined_call_operand.vmem [shape: f32[8,1], index: 2, kind: input, shape index: {}]   ;;  %s2803_s3 = inlined_call_operand.vmem [shape: f32[8,1], index: 3, kind: input, shape index: {}]   ;;  %s2804_s4 = inlined_call_operand.vmem [shape: bf16[9,8,8], index: 4, kind: input, shape index: {}]   ;;  %s2805_s5 = inlined_call_operand.vmem [shape: f32[8,1], index: 5, kind: input, shape index: {}]   ;;  %s2806_s6 = inlined_call_operand.vmem [shape: f32[8,1], index: 6, kind: input, shape index: {}]   ;;  %s2807_s7 = inlined_call_operand.vmem [shape: f32[8,4], index: 7, kind: input, shape index: {}]   ;;  %s2808_s8 = inlined_call_operand.vmem [shape: f32[8,1], index: 8, kind: input, shape index: {}]   ;;  %s2809_s9 = inlined_call_operand.vmem [shape: f32[8,1], index: 9, kind: input, shape index: {}]   ;;  %s2810_s10 = inlined_call_operand.vmem [shape: f32[9,256], index: 10, kind: input, shape index: {}]   ;;  %s2811_s11 = inlined_call_operand.vmem [shape: f32[2,8,256], index: 11, kind: output, shape index: {}]  }
   0x1 LB: > { %s2091_s18 = sadd.s32 4294967295, %s2212_s17   ;;  %p2095_p0 = scmp.ge.s32.totalorder %s2212_s17, 1  ;;  %s2212_s17 = sphi %s2287_s17, %s21_s17  }
   0x2   : > { %p337_p1 = scmp.lt.s32.totalorder %s2212_s17, 3 }
   0x4   : > { %p338_p2 = pnand %p2095_p0, %p337_p1 }
   0x5   : > { %p377_p3 = scmp.lt.s32.totalorder (!%p338_p2), %s2091_s18, 1  ;;  %s2215_s27 = smov (!%p338_p2), 112  }
   0x6   : > { %341 = sbr.rel (%p338_p2) target bundleno = 876 (0x36c), region = 64  ;;  %s2216_s28 = smov (!%p338_p2), 113  }
   0x7   : > { %s2217_s29 = smov (!%p338_p2), 111   ;;  %s2218_s30 = smov (!%p338_p2), 127  }
   0x8   : > { %s2219_s12 = smov (!%p338_p2), 16   ;;  %s2220_s13 = smov (!%p338_p2), 15  }
   0x9   : > { %s2221_s14 = smov (!%p338_p2), 17   ;;  %s2223_s15 = smov (!%p338_p2), 1  }
   0xb   : > { %v399_v0 = vlaneseq  ;;  %v2214_v1 = vmov 0.0   ;;  %v2300_v3 = vld [vmem:[%s2810_s10] sm:$0xff]  ;;  %v2305_v4 = vld [vmem:[%s2810_s10 + $0x8] sm:$0xff]  ;;  %s2813_s18 = smov (!%p377_p3, %s2091_s18), 1  ;;  %vm440_vm0 = vcmask 916480   ;;  %vm413_vm1 = vcmask 908288  }
   0xc   : > { %392 = vst [vmem:[#allocation2] sm:$0xff] %v2214_v1  ;;  %393 = vst [vmem:[#allocation2 + $0x8] sm:$0xff] %v2214_v1  ;;  %s2156_s23 = sshll.u32 %s2813_s18, 2  ;;  %vm594_vm2 = vcmask 924672   ;;  %v2222_v48 = vmov 0   ;;  %vm686_vm3 = vcmask 1039360  }
   0xd   : > { %v2295_v2 = vshrl.u32 %v399_v0, 7  ;;  %s2357_s26 = scalar_lea.vmem %s2800_s0, %s2156_s23  ;;  %509 = vmatprep.mubr.bf16.mxu0 %v2222_v48  ;;  %571 = vmatprep.mubr.bf16.mxu1 %v2222_v48  ;;  %vm776_vm4 = vcmask 1043456   ;;  %vm463_vm5 = vcmask 130048   ;;  %vm470_vm6 = vcmask 1041408  }
   0xe   : > { %v394_v19 = vld [vmem:[%s2357_s26] sm:$0xf]  ;;  %2200 = vset.pattern.permute.xlu1 %v2222_v48  ;;  %2199 = vset.pattern.permute.xlu0 %v2222_v48  ;;  %vm527_vm7 = vcmask 138240   ;;  %vm466_vm8 = vcmask 31744   ;;  %vm617_vm9 = vcmask 121856   ;;  %vm709_vm10 = vcmask 7168  }
   0xf   : > { %v2308_v5 = vsub.s32 1, %v2295_v2  ;;  %v2311_v6 = vsub.s32 2, %v2295_v2  ;;  %v2314_v7 = vsub.s32 0, %v2295_v2  ;;  %v2317_v8 = vsub.s32 3, %v2295_v2 }
  0x10   : > { %v395_v20 = vunpack.c.l.bf16 %v394_v19  ;;  %v2388_v43 = vsub.s32 5, %v2295_v2  ;;  %v2414_v59 = vsub.s32 6, %v2295_v2  ;;  %v2427_v1 = vsub.s32 7, %v2295_v2 }
  0x11   : > { %v2323_v9 = vrot.slane %v2300_v3, %v2308_v5  ;;  %v2327_v10 = vrot.slane %v2305_v4, %v2308_v5  ;;  %v2331_v11 = vrot.slane %v2300_v3, %v2311_v6  ;;  %v2335_v12 = vrot.slane %v2305_v4, %v2311_v6 }
  0x12   : > { %v2340_v13 = vrot.slane %v2300_v3, %v2314_v7  ;;  %v2344_v14 = vrot.slane %v2305_v4, %v2314_v7  ;;  %v2348_v15 = vrot.slane %v2300_v3, %v2317_v8  ;;  %v2352_v16 = vrot.slane %v2305_v4, %v2317_v8  ;;  %396 = vst [vmem:[#allocation2 + $0x4] sm:$0xff] %v395_v20 }
  0x13   : > { %v436_v17 = vcombine.low %v2323_v9, %v2327_v10  ;;  %v590_v18 = vcombine.low %v2331_v11, %v2335_v12  ;;  %v2395_v50 = vrot.slane %v2300_v3, %v2388_v43  ;;  %v2399_v51 = vrot.slane %v2305_v4, %v2388_v43 }
  0x14   : > { %v409_v21 = vcombine.low %v2340_v13, %v2344_v14  ;;  %v682_v22 = vcombine.low %v2348_v15, %v2352_v16  ;;  %v2418_v62 = vrot.slane %v2300_v3, %v2414_v59  ;;  %v2422_v63 = vrot.slane %v2305_v4, %v2414_v59 }
  0x15   : > { %437 = vrot.lane.b32.xlu0 %v436_v17, %s2215_s27  ;;  %591 = vrot.lane.b32.xlu1 %v590_v18, %s2216_s28  ;;  %v862_v52 = vcombine.low %v2395_v50, %v2399_v51  ;;  %vm1237_vm11 = vcmask 64512  }
  0x16   : > { %v943_v18 = vcombine.low %v2418_v62, %v2422_v63 }
  0x19   : > { %410 = vrot.lane.b32.xlu0 %v409_v21, %s2217_s29  ;;  %683 = vrot.lane.b32.xlu1 %v682_v22, %s2218_s30  ;;  %v2372_v24 = vld [vmem:[#allocation2 + $0x8] sm:$0xff]  ;;  %v2376_v31 = vld [vmem:[#allocation2] sm:$0xff]  ;;  %v2434_v21 = vrot.slane %v2300_v3, %v2427_v1  ;;  %v2438_v22 = vrot.slane %v2305_v4, %v2427_v1 }
  0x1a   : > { %v2179_v58 = vpack.i.bf16 %v2372_v24, %v2376_v31 }
  0x87   : > { %v438_v23 = vpop.permute.xlu0 %437  ;;  %v592_v25 = vpop.permute.xlu1 %591 }
  0x88   : > { %v439_v26 = vrot.slane %v438_v23, 4  ;;  %v593_v27 = vrot.slane %v592_v25, 4 }
  0x8a   : > { %v445_v28 = vmul.f32 %v439_v26, %v2372_v24  ;;  %v599_v29 = vmul.f32 %v593_v27, %v2372_v24  ;;  %v441_v32 = vsel %vm440_vm0, %v439_v26, %v438_v23  ;;  %v595_v39 = vsel %vm594_vm2, %v593_v27, %v592_v25  ;;  %v2447_v25 = vld [vmem:[%s2810_s10 + $0x10] ss:$0 sm:$0xff]  ;;  %v2452_v26 = vld [vmem:[%s2810_s10 + $0x18] ss:$0 sm:$0xff] }
  0x8b   : > { %v411_v30 = vpop.permute.xlu0 %410  ;;  %v444_v38 = vmul.f32 %v441_v32, %v2376_v31  ;;  %v684_v42 = vpop.permute.xlu1 %683  ;;  %v598_v44 = vmul.f32 %v595_v39, %v2376_v31  ;;  %v1024_v23 = vcombine.low %v2434_v21, %v2438_v22  ;;  %v1167_v32 = vld [vmem:[%s2802_s2] sm:$0xff] }
  0x8c   : > { %v412_v33 = vrot.slane %v411_v30, 4  ;;  %v453_v34 = vpack.c.bf16 %v445_v28, %v445_v28  ;;  %v607_v37 = vpack.c.bf16 %v599_v29, %v599_v29  ;;  %v685_v46 = vrot.slane %v684_v42, 4 }
  0x8d   : > { %v451_v45 = vpack.c.bf16 %v444_v38, %v444_v38  ;;  %v449_v47 = vcombine.high %v444_v38, %v444_v38  ;;  %v605_v54 = vpack.c.bf16 %v598_v44, %v598_v44  ;;  %v603_v61 = vcombine.high %v598_v44, %v598_v44 }
  0x8e   : > { %v414_v35 = vsel %vm413_vm1, %v412_v33, %v411_v30  ;;  %v418_v36 = vmul.f32 %v412_v33, %v2372_v24  ;;  %461 = vrot.lane.b32.xlu0 %v453_v34, %s2219_s12  ;;  %v687_v53 = vsel %vm686_vm3, %v685_v46, %v684_v42  ;;  %v691_v17 = vmul.f32 %v685_v46, %v2372_v24  ;;  %v1175_v30 = vld [vmem:[%s2803_s3] sm:$0xff] }
  0x8f   : > { %v417_v40 = vmul.f32 %v414_v35, %v2376_v31  ;;  %v452_v55 = vpack.c.bf16 %v449_v47, %v449_v47  ;;  %v690_v57 = vmul.f32 %v687_v53, %v2376_v31  ;;  %v606_v19 = vpack.c.bf16 %v603_v61, %v603_v61 }
  0x90   : > { %v425_v41 = vpack.c.bf16 %v418_v36, %v418_v36  ;;  %v699_v28 = vpack.c.bf16 %v691_v17, %v691_v17  ;;  %v1105_v29 = vcombine.low %v2447_v25, %v2452_v26 }
  0x91   : > { %v423_v49 = vpack.c.bf16 %v417_v40, %v417_v40  ;;  %v421_v56 = vcombine.high %v417_v40, %v417_v40  ;;  %v697_v0 = vpack.c.bf16 %v690_v57, %v690_v57  ;;  %v695_v20 = vcombine.high %v690_v57, %v690_v57 }
  0x92   : > { %615 = vrot.lane.b32.xlu0 %v607_v37, %s2220_s13  ;;  %525 = vrot.lane.b32.xlu1 %v425_v41, %s2221_s14 }
  0x93   : > { %v424_v60 = vpack.c.bf16 %v421_v56, %v421_v56  ;;  %v698_v27 = vpack.c.bf16 %v695_v20, %v695_v20 }
  0x96   : > { %457 = vrot.lane.b32.xlu0 %v451_v45, %s2219_s12  ;;  %521 = vrot.lane.b32.xlu1 %v423_v49, %s2221_s14 }
  0x9a   : > { %611 = vrot.lane.b32.xlu0 %v605_v54, %s2220_s13  ;;  %459 = vrot.lane.b32.xlu1 %v452_v55, %s2219_s12  ;;  %v419_v54 = vld [vmem:[%s2801_s1] sm:$0xf] }
  0x9e   : > { %2180 = vrot.lane.b32.xlu1 %v2179_v58, %s2218_s30  ;;  %523 = vrot.lane.b32.xlu0 %v424_v60, %s2221_s14 }
  0xa2   : > { %613 = vrot.lane.b32.xlu1 %v606_v19, %s2220_s13  ;;  %703 = vrot.lane.b32.xlu0 %v697_v0, %s2223_s15 }
  0xa6   : > { %705 = vrot.lane.b32.xlu1 %v698_v27, %s2223_s15  ;;  %707 = vrot.lane.b32.xlu0 %v699_v28, %s2223_s15  ;;  %v2105_v27 = vld [vmem:[%s2801_s1 + $0x8] sm:$0xf] }
  0xaa   : > { %2185 = vrot.lane.b32.xlu1 %v2179_v58, %s2216_s28  ;;  %2190 = vrot.lane.b32.xlu0 %v2179_v58, %s2215_s27 }
  0xae   : > { %2195 = vrot.lane.b32.xlu1 %v2179_v58, %s2217_s29  ;;  %1170 = vperm.xlu0 %2199, %v1167_v32  }
  0xb2   : > { %1178 = vperm.xlu1 %2200, %v1175_v30   ;;  %1212 = vrot.lane.b32.xlu0 %v2327_v10, %s2215_s27  ;;  %v2500_v10 = vsub.s32 4, %v2295_v2 }
  0xb6   : > { %1210 = vrot.lane.b32.xlu1 %v2323_v9, %s2215_s27  ;;  %1197 = vrot.lane.b32.xlu0 %v2344_v14, %s2217_s29  ;;  %v2508_v14 = vrot.slane %v2305_v4, %v2500_v10 }
  0xba   : > { %1195 = vrot.lane.b32.xlu1 %v2340_v13, %s2217_s29  ;;  %1351 = vrot.lane.b32.xlu0 %v2335_v12, %s2216_s28  ;;  %v2504_v13 = vrot.slane %v2300_v3, %v2500_v10 }
  0xbc   : > { %v781_v2 = vcombine.low %v2504_v13, %v2508_v14 }
  0xbe   : > { %1349 = vrot.lane.b32.xlu1 %v2331_v11, %s2216_s28  ;;  %1430 = vrot.lane.b32.xlu0 %v2352_v16, %s2218_s30  ;;  %v775_v16 = vrot.slane %v2372_v24, 4 }
  0xc2   : > { %1428 = vrot.lane.b32.xlu1 %v2348_v15, %s2218_s30  ;;  %1567 = vrot.lane.b32.xlu0 %v2399_v51, %s2223_s15  ;;  %v774_v15 = vrot.slane %v2376_v31, 4  ;;  %v2100_v31 = vld [vmem:[%s2801_s1 + $0x4] sm:$0xf] }
  0xc4   : > { %v777_v35 = vsel %vm776_vm4, %v774_v15, %v775_v16  ;;  %v2108_v15 = vld [vmem:[%s2801_s1 + $0xc] sm:$0xf] }
  0xc5   : > { %v783_v37 = vmul.f32 %v781_v2, %v777_v35 }
  0xc6   : > { %1565 = vrot.lane.b32.xlu1 %v2395_v50, %s2223_s15  ;;  %1648 = vrot.lane.b32.xlu0 %v2422_v63, %s2220_s13 }
  0xc7   : > { %v787_v41 = vcombine.high %v783_v37, %v783_v37  ;;  %v789_v58 = vpack.c.bf16 %v783_v37, %v783_v37 }
  0xc9   : > { %v790_v57 = vpack.c.bf16 %v787_v41, %v787_v41  ;;  %v795_v32 = vsel %vm470_vm6, %v789_v58, 0 }
  0xca   : > { %1646 = vrot.lane.b32.xlu1 %v2418_v62, %s2220_s13  ;;  %1729 = vrot.lane.b32.xlu0 %v2438_v22, %s2219_s12 }
  0xce   : > { %1727 = vrot.lane.b32.xlu1 %v2434_v21, %s2219_s12  ;;  %1810 = vrot.lane.b32.xlu0 %v2452_v26, %s2221_s14 }
  0xd2   : > { %1808 = vrot.lane.b32.xlu1 %v2447_v25, %s2221_s14  ;;  %v2117_v25 = vld [vmem:[%s2801_s1 + $0x18] sm:$0xf] }
 0x100   : > { %v462_v9 = vpop.permute.xlu0 %461 }
 0x104   : > { %v616_v11 = vpop.permute.xlu0 %615  ;;  %v526_v12 = vpop.permute.xlu1 %525 }
 0x108   : > { %v458_v33 = vpop.permute.xlu0 %457  ;;  %v522_v34 = vpop.permute.xlu1 %521 }
 0x10c   : > { %v612_v3 = vpop.permute.xlu0 %611  ;;  %v460_v36 = vpop.permute.xlu1 %459 }
 0x10d   : > { %v465_v4 = vsel %vm463_vm5, %v460_v36, %v462_v9  ;;  %v464_v38 = vsel %vm463_vm5, %v458_v33, %v460_v36 }
 0x10e   : > { %2101 = vmatprep.subr.msk.bf16.mxu0 %vm470_vm6, %v465_v4  ;;  %v472_v24 = vsel %vm470_vm6, %v464_v38, 0 }
 0x10f   : > { %492 = vmatpush1.bf16.msra.mxu0 %v472_v24 }
 0x110   : > { %v2181_v39 = vpop.permute.xlu1 %2180  ;;  %v524_v40 = vpop.permute.xlu0 %523 }
 0x111   : > { %v2183_v42 = vunpack.i.h.bf16 %v2181_v39  ;;  %v2182_v44 = vunpack.i.l.bf16 %v2181_v39  ;;  %v529_v45 = vsel %vm527_vm7, %v524_v40, %v526_v12  ;;  %v528_v46 = vsel %vm527_vm7, %v522_v34, %v524_v40 }
 0x112   : > { %2102 = vmatmul.mubr.msk.bf16.vlgmr.msra.gmra.mxu0 %vm466_vm8, %v2100_v31  ;;  %2103 = vmatprep.subr.msk.bf16.mxu1 %vm470_vm6, %v529_v45  ;;  %v534_v47 = vsel %vm470_vm6, %v528_v46, 0  ;;  %v2111_v31 = vld [vmem:[%s2801_s1 + $0x10] sm:$0xf] }
 0x113   : > { %v856_v49 = vrot.slane %v2183_v42, 4  ;;  %v855_v53 = vrot.slane %v2182_v44, 4  ;;  %554 = vmatpush1.bf16.msra.mxu1 %v534_v47  ;;  %661 = vmatprep.mubr.bf16.mxu0 %v2222_v48 }
 0x114   : > { %v614_v55 = vpop.permute.xlu1 %613  ;;  %v704_v56 = vpop.permute.xlu0 %703 }
 0x115   : > { %v857_v60 = vsel %vm776_vm4, %v855_v53, %v856_v49  ;;  %v618_v61 = vsel %vm617_vm9, %v612_v3, %v614_v55  ;;  %v619_v0 = vsel %vm617_vm9, %v614_v55, %v616_v11  ;;  %v2114_v55 = vld [vmem:[%s2801_s1 + $0x14] sm:$0xf] }
 0x116   : > { %v858_v17 = vsel %vm686_vm3, %v857_v60, %v2183_v42  ;;  %v624_v19 = vsel %vm470_vm6, %v618_v61, 0  ;;  %2104 = vmatmul.mubr.msk.bf16.vlgmr.msra.gmra.mxu1 %vm466_vm8, %v419_v54  ;;  %2106 = vmatprep.subr.msk.bf16.mxu0 %vm470_vm6, %v619_v0 }
 0x117   : > { %v864_v20 = vmul.f32 %v862_v52, %v858_v17  ;;  %644 = vmatpush1.bf16.msra.mxu0 %v624_v19  ;;  %753 = vmatprep.mubr.bf16.mxu1 %v2222_v48 }
 0x118   : > { %v706_v28 = vpop.permute.xlu1 %705  ;;  %v708_v30 = vpop.permute.xlu0 %707  ;;  %2112 = vmatprep.subr.msk.bf16.mxu0 %vm470_vm6, %v790_v57 }
 0x119   : > { %v710_v9 = vsel %vm709_vm10, %v704_v56, %v706_v28  ;;  %v711_v11 = vsel %vm709_vm10, %v706_v28, %v708_v30  ;;  %v868_v12 = vcombine.high %v864_v20, %v864_v20  ;;  %v870_v51 = vpack.c.bf16 %v864_v20, %v864_v20  ;;  %v2125_v20 = vld [vmem:[%s2801_s1 + $0x20] sm:$0xf] }
 0x11a   : > { %v716_v50 = vsel %vm470_vm6, %v710_v9, 0  ;;  %2107 = vmatmul.mubr.msk.bf16.vlgmr.msra.gmra.mxu0 %vm466_vm8, %v2105_v27  ;;  %2109 = vmatprep.subr.msk.bf16.mxu1 %vm470_vm6, %v711_v11 }
 0x11b   : > { %736 = vmatpush1.bf16.msra.mxu1 %v716_v50  ;;  %v871_v52 = vpack.c.bf16 %v868_v12, %v868_v12  ;;  %815 = vmatpush1.bf16.msra.mxu0 %v795_v32  ;;  %v876_v36 = vsel %vm470_vm6, %v870_v51, 0 }
 0x11c   : > { %v2186_v16 = vpop.permute.xlu1 %2185  ;;  %v2191_v33 = vpop.permute.xlu0 %2190  ;;  %832 = vmatprep.mubr.bf16.mxu0 %v2222_v48 }
 0x11d   : > { %v2188_v34 = vunpack.i.h.bf16 %v2186_v16  ;;  %v2187_v2 = vunpack.i.l.bf16 %v2186_v16  ;;  %2115 = vmatprep.subr.msk.bf16.mxu1 %vm470_vm6, %v871_v52  ;;  %v2193_v35 = vunpack.i.h.bf16 %v2191_v33  ;;  %v2192_v3 = vunpack.i.l.bf16 %v2191_v33 }
 0x11e   : > { %2110 = vmatmul.mubr.msk.bf16.vlgmr.msra.gmra.mxu1 %vm466_vm8, %v2108_v15 }
 0x11f   : > { %v937_v37 = vrot.slane %v2188_v34, 4  ;;  %v936_v4 = vrot.slane %v2187_v2, 4  ;;  %v1018_v38 = vrot.slane %v2193_v35, 4  ;;  %v1017_v24 = vrot.slane %v2192_v3, 4  ;;  %896 = vmatpush1.bf16.msra.mxu1 %v876_v36  ;;  %913 = vmatprep.mubr.bf16.mxu1 %v2222_v48 }
 0x120   : > { %v2196_v39 = vpop.permute.xlu1 %2195 }
 0x121   : > { %v938_v40 = vsel %vm776_vm4, %v936_v4, %v937_v37  ;;  %v1019_v41 = vsel %vm776_vm4, %v1017_v24, %v1018_v38  ;;  %v2198_v42 = vunpack.i.h.bf16 %v2196_v39  ;;  %v2197_v44 = vunpack.i.l.bf16 %v2196_v39 }
 0x122   : > { %v939_v45 = vsel %vm594_vm2, %v938_v40, %v2188_v34  ;;  %v1020_v46 = vsel %vm440_vm0, %v1019_v41, %v2193_v35  ;;  %2113 = vmatmul.mubr.msk.bf16.vlgmr.msra.gmra.mxu0 %vm466_vm8, %v2111_v31  ;;  %v2224_v34 = vmov 1  }
 0x123   : > { %v945_v47 = vmul.f32 %v943_v18, %v939_v45  ;;  %v1026_v49 = vmul.f32 %v1024_v23, %v1020_v46  ;;  %v1099_v53 = vrot.slane %v2198_v42, 4  ;;  %v1098_v54 = vrot.slane %v2197_v44, 4  ;;  %994 = vmatprep.mubr.bf16.mxu0 %v2222_v48  ;;  %2201 = vset.pattern.permute.xlu0 %v2224_v34 }
 0x125   : > { %v1100_v56 = vsel %vm776_vm4, %v1098_v54, %v1099_v53  ;;  %v949_v57 = vcombine.high %v945_v47, %v945_v47  ;;  %v951_v58 = vpack.c.bf16 %v945_v47, %v945_v47  ;;  %v1030_v60 = vcombine.high %v1026_v49, %v1026_v49 }
 0x126   : > { %v1101_v62 = vsel %vm413_vm1, %v1100_v56, %v2198_v42  ;;  %2116 = vmatmul.mubr.msk.bf16.vlgmr.msra.gmra.mxu1 %vm466_vm8, %v2114_v55  ;;  %v1032_v63 = vpack.c.bf16 %v1026_v49, %v1026_v49 }
 0x127   : > { %v1107_v18 = vmul.f32 %v1105_v29, %v1101_v62  ;;  %v952_v21 = vpack.c.bf16 %v949_v57, %v949_v57  ;;  %v1033_v22 = vpack.c.bf16 %v1030_v60, %v1030_v60  ;;  %1075 = vmatprep.mubr.bf16.mxu1 %v2222_v48  ;;  %v957_v61 = vsel %vm470_vm6, %v951_v58, 0  ;;  %v2120_v29 = vld [vmem:[%s2801_s1 + $0x1c] sm:$0xf] }
 0x128   : > { %v1038_v23 = vsel %vm470_vm6, %v1032_v63, 0 }
 0x129   : > { %2118 = vmatprep.subr.msk.bf16.mxu0 %vm470_vm6, %v952_v21  ;;  %2121 = vmatprep.subr.msk.bf16.mxu1 %vm470_vm6, %v1033_v22  ;;  %v1111_v0 = vcombine.high %v1107_v18, %v1107_v18  ;;  %v1113_v17 = vpack.c.bf16 %v1107_v18, %v1107_v18  ;;  %v1171_v18 = vpop.permute.xlu0 %1170 }
 0x12a   : > { %977 = vmatpush1.bf16.msra.mxu0 %v957_v61  ;;  %1058 = vmatpush1.bf16.msra.mxu1 %v1038_v23 }
 0x12b   : > { %v1114_v26 = vpack.c.bf16 %v1111_v0, %v1111_v0  ;;  %v1119_v19 = vsel %vm470_vm6, %v1113_v17, 0 }
 0x12d   : > { %2119 = vmatmul.mubr.msk.bf16.vlgmr.msra.gmra.mxu0 %vm466_vm8, %v2117_v25  ;;  %2126 = vmatprep.subr.msk.bf16.mxu0 %vm470_vm6, %v1114_v26  ;;  %v2606_v27 = vpop.permute.xlu1 %1178 }
 0x12e   : > { %2122 = vmatmul.mubr.msk.bf16.vlgmr.msra.gmra.mxu1 %vm466_vm8, %v2120_v29  ;;  %1139 = vmatpush1.bf16.msra.mxu0 %v1119_v19  ;;  %v1213_v19 = vpop.permute.xlu0 %1212 }
 0x12f   : > { %1156 = vmatprep.mubr.bf16.mxu0 %v2222_v48  ;;  %1279 = vmatprep.mubr.bf16.mxu1 %v2222_v48 }
 0x131   : > { %v2608_v28 = vpop.permute.xlu1 %1210 }
 0x132   : > { %v1218_v30 = vmul.f32 0.0, %v2608_v28 }
 0x134   : > { %v1223_v32 = vpack.c.bf16 %v1218_v30, %v1218_v30 }
 0x135   : > { %2127 = vmatmul.mubr.msk.bf16.vlgmr.msra.gmra.mxu0 %vm466_vm8, %v2125_v20  ;;  %v2611_v9 = vpop.permute.xlu1 %1195 }
 0x136   : > { %1340 = vmatprep.mubr.bf16.mxu0 %v2222_v48  ;;  %v1203_v11 = vmul.f32 0.0, %v2611_v9  ;;  %1229 = vrot.lane.b32.xlu1 %v1223_v32, %s2219_s12 }
 0x138   : > { %v1207_v12 = vpack.c.bf16 %v1203_v11, %v1203_v11 }
 0x139   : > { %v2615_v50 = vpop.permute.xlu1 %1349 }
 0x13a   : > { %v1357_v51 = vmul.f32 0.0, %v2615_v50  ;;  %1291 = vrot.lane.b32.xlu0 %v1207_v12, %s2221_s14 }
 0x13c   : > { %v1362_v52 = vpack.c.bf16 %v1357_v51, %v1357_v51 }
 0x13d   : > { %v2619_v15 = vpop.permute.xlu1 %1428 }
 0x13e   : > { %v1436_v16 = vmul.f32 0.0, %v2619_v15  ;;  %1368 = vrot.lane.b32.xlu1 %v1362_v52, %s2220_s13 }
 0x140   : > { %v1441_v33 = vpack.c.bf16 %v1436_v16, %v1436_v16 }
 0x142   : > { %1447 = vrot.lane.b32.xlu0 %v1441_v33, %s2223_s15 }
 0x1d2   : > { %v511_v2 = vpop.f32.mrf.mxu0 }
 0x1d4   : > { %v513_v35 = vpop.f32.mrf.mxu0 }
 0x1d6   : > { %v515_v3 = vpop.f32.mrf.mxu0  ;;  %v573_v36 = vpop.f32.mrf.mxu1 }
 0x1d7   : > { %v574_v53 = vadd.f32 %v573_v36, %v511_v2  ;;  %v1198_v2 = vpop.permute.xlu0 %1197 }
 0x1d8   : > { %v516_v37 = vpop.f32.mrf.mxu0  ;;  %v575_v4 = vpop.f32.mrf.mxu1 }
 0x1d9   : > { %v576_v56 = vadd.f32 %v575_v4, %v513_v35 }
 0x1da   : > { %v577_v38 = vpop.f32.mrf.mxu1  ;;  %v663_v24 = vpop.f32.mrf.mxu0 }
 0x1db   : > { %v670_v57 = vadd.f32 %v663_v24, %v574_v53 }
 0x1dc   : > { %v578_v31 = vpop.f32.mrf.mxu1  ;;  %v665_v39 = vpop.f32.mrf.mxu0 }
 0x1dd   : > { %v671_v62 = vadd.f32 %v665_v39, %v576_v56 }
 0x1de   : > { %v667_v40 = vpop.f32.mrf.mxu0  ;;  %v755_v41 = vpop.f32.mrf.mxu1 }
 0x1df   : > { %v762_v63 = vadd.f32 %v755_v41, %v670_v57  ;;  %v1352_v40 = vpop.permute.xlu0 %1351 }
 0x1e0   : > { %v668_v42 = vpop.f32.mrf.mxu0  ;;  %v757_v44 = vpop.f32.mrf.mxu1  ;;  %v1353_v53 = vsel %vm594_vm2, %v2615_v50, %v1352_v40 }
 0x1e1   : > { %v763_v22 = vadd.f32 %v757_v44, %v671_v62  ;;  %v1214_v44 = vsel %vm440_vm0, %v2608_v28, %v1213_v19  ;;  %v1566_v28 = vpop.permute.xlu1 %1565 }
 0x1e2   : > { %v759_v45 = vpop.f32.mrf.mxu1  ;;  %v834_v46 = vpop.f32.mrf.mxu0 }
 0x1e3   : > { %v841_v23 = vadd.f32 %v834_v46, %v762_v63  ;;  %v1199_v45 = vsel %vm413_vm1, %v2611_v9, %v1198_v2  ;;  %v1431_v57 = vpop.permute.xlu0 %1430 }
 0x1e4   : > { %v760_v47 = vpop.f32.mrf.mxu1  ;;  %v836_v49 = vpop.f32.mrf.mxu0  ;;  %v1432_v9 = vsel %vm686_vm3, %v2619_v15, %v1431_v57 }
 0x1e5   : > { %v842_v17 = vadd.f32 %v836_v49, %v763_v22 }
 0x1e6   : > { %v838_v54 = vpop.f32.mrf.mxu0  ;;  %v915_v55 = vpop.f32.mrf.mxu1 }
 0x1e7   : > { %v922_v25 = vadd.f32 %v915_v55, %v841_v23  ;;  %v1568_v63 = vpop.permute.xlu0 %1567 }
 0x1e8   : > { %v839_v58 = vpop.f32.mrf.mxu0  ;;  %v917_v60 = vpop.f32.mrf.mxu1 }
 0x1e9   : > { %v923_v20 = vadd.f32 %v917_v60, %v842_v17 }
 0x1ea   : > { %v919_v21 = vpop.f32.mrf.mxu1 }
 0x1ec   : > { %v920_v61 = vpop.f32.mrf.mxu1 }
 0x1ed   : > { %v996_v0 = vpop.f32.mrf.mxu0 }
 0x1ee   : > { %v1077_v26 = vpop.f32.mrf.mxu1  ;;  %v1003_v30 = vadd.f32 %v996_v0, %v922_v25 }
 0x1ef   : > { %v998_v29 = vpop.f32.mrf.mxu0 }
 0x1f0   : > { %v1079_v32 = vpop.f32.mrf.mxu1  ;;  %v1004_v12 = vadd.f32 %v998_v29, %v923_v20  ;;  %v1084_v16 = vadd.f32 %v1077_v26, %v1003_v30  ;;  %v1649_v26 = vpop.permute.xlu0 %1648  ;;  %v1576_v20 = vmul.f32 0.0, %v1568_v63 }
 0x1f1   : > { %v1000_v11 = vpop.f32.mrf.mxu0  ;;  %v1657_v29 = vmul.f32 0.0, %v1649_v26 }
 0x1f2   : > { %v1081_v51 = vpop.f32.mrf.mxu1  ;;  %v1085_v35 = vadd.f32 %v1079_v32, %v1004_v12  ;;  %v1570_v11 = vsel %vm709_vm10, %v1566_v28, %v1568_v63 }
 0x1f3   : > { %v1001_v52 = vpop.f32.mrf.mxu0  ;;  %v1662_v12 = vpack.c.bf16 %v1657_v29, %v1657_v29  ;;  %v1581_v51 = vpack.c.bf16 %v1576_v20, %v1576_v20 }
 0x1f4   : > { %v1082_v33 = vpop.f32.mrf.mxu1 }
 0x1f5   : > { %v1158_v34 = vpop.f32.mrf.mxu0 }
 0x1f6   : > { %v1165_v3 = vadd.f32 %v1158_v34, %v1084_v16  ;;  %v1730_v16 = vpop.permute.xlu0 %1729 }
 0x1f7   : > { %v1160_v36 = vpop.f32.mrf.mxu0 }
 0x1f8   : > { %v1173_v37 = vmul.f32 %v1171_v18, %v1165_v3  ;;  %v1166_v4 = vadd.f32 %v1160_v36, %v1085_v35 }
 0x1f9   : > { %v1162_v38 = vpop.f32.mrf.mxu0 }
 0x1fa   : > { %v1181_v24 = vadd.f32 %v2606_v27, %v1173_v37  ;;  %v1174_v31 = vmul.f32 %v1171_v18, %v1166_v4  ;;  %v1647_v18 = vpop.permute.xlu1 %1646  ;;  %v1738_v38 = vmul.f32 0.0, %v1730_v16 }
 0x1fb   : > { %v1163_v39 = vpop.f32.mrf.mxu0  ;;  %v1651_v34 = vsel %vm617_vm9, %v1647_v18, %v1649_v26 }
 0x1fc   : > { %v2625_v41 = vmax.f32 %v1181_v24, 0.0  ;;  %v1182_v42 = vadd.f32 %v2606_v27, %v1174_v31  ;;  %v1811_v24 = vpop.permute.xlu0 %1810 }
 0x1fe   : > { %v2632_v46 = vmax.f32 %v1182_v42, 0.0  ;;  %v1219_v47 = vmul.f32 %v1214_v44, %v2625_v41  ;;  %v1204_v49 = vmul.f32 %v1199_v45, %v2625_v41  ;;  %v1358_v56 = vmul.f32 %v1353_v53, %v2625_v41 }
 0x1ff   : > { %v1437_v62 = vmul.f32 %v1432_v9, %v2625_v41  ;;  %v1655_v61 = vmul.f32 %v1647_v18, %v2625_v41  ;;  %v1574_v17 = vmul.f32 %v1566_v28, %v2625_v41  ;;  %v1743_v44 = vpack.c.bf16 %v1738_v38, %v1738_v38  ;;  %v2014_v9 = vld [vmem:[%s2808_s8] sm:$0xff] }
 0x200   : > { %v1224_v54 = vpack.c.bf16 %v1219_v47, %v1219_v47  ;;  %v1208_v55 = vpack.c.bf16 %v1204_v49, %v1204_v49  ;;  %v1220_v27 = vmul.f32 %v1213_v19, %v2632_v46  ;;  %v1363_v58 = vpack.c.bf16 %v1358_v56, %v1358_v56  ;;  %v1728_v19 = vpop.permute.xlu1 %1727  ;;  %v1889_v56 = vld [vmem:[%s2805_s5] sm:$0xff] }
 0x201   : > { %v1205_v50 = vmul.f32 %v1198_v2, %v2632_v46  ;;  %v1442_v21 = vpack.c.bf16 %v1437_v62, %v1437_v62  ;;  %v1359_v23 = vmul.f32 %v1352_v40, %v2632_v46  ;;  %v1660_v0 = vpack.c.bf16 %v1655_v61, %v1655_v61 }
 0x202   : > { %1231 = vrot.lane.b32.xlu0 %v1224_v54, %s2219_s12  ;;  %1293 = vrot.lane.b32.xlu1 %v1208_v55, %s2221_s14  ;;  %v1225_v60 = vpack.c.bf16 %v1220_v27, %v1220_v27  ;;  %v1438_v25 = vmul.f32 %v1431_v57, %v2632_v46  ;;  %v1579_v30 = vpack.c.bf16 %v1574_v17, %v1574_v17  ;;  %v1819_v45 = vmul.f32 0.0, %v1811_v24  ;;  %v1907_v55 = vld [vmem:[%s2807_s7] sm:$0xff] }
 0x203   : > { %v1209_v22 = vpack.c.bf16 %v1205_v50, %v1205_v50  ;;  %v1364_v15 = vpack.c.bf16 %v1359_v23, %v1359_v23  ;;  %v1736_v52 = vmul.f32 %v1728_v19, %v2625_v41  ;;  %v1575_v33 = vmul.f32 %v1570_v11, %v2632_v46  ;;  %v2022_v57 = vld [vmem:[%s2809_s9] sm:$0xff] }
 0x204   : > { %v1443_v32 = vpack.c.bf16 %v1438_v25, %v1438_v25  ;;  %v1809_v2 = vpop.permute.xlu1 %1808  ;;  %v1656_v37 = vmul.f32 %v1651_v34, %v2632_v46  ;;  %v1732_v4 = vsel %vm463_vm5, %v1728_v19, %v1730_v16  ;;  %v1824_v53 = vpack.c.bf16 %v1819_v45, %v1819_v45  ;;  %v2128_v25 = vld [vmem:[%s2804_s4 + $0x4] sm:$0xf]  ;;  %v2142_v45 = vld [vmem:[%s2804_s4 + $0x14] sm:$0xf] }
 0x205   : > { %v1741_v35 = vpack.c.bf16 %v1736_v52, %v1736_v52  ;;  %v1817_v3 = vmul.f32 %v1809_v2, %v2625_v41  ;;  %v1580_v36 = vpack.c.bf16 %v1575_v33, %v1575_v33  ;;  %v1737_v31 = vmul.f32 %v1732_v4, %v2632_v46 }
 0x206   : > { %1370 = vrot.lane.b32.xlu0 %v1363_v58, %s2220_s13  ;;  %1233 = vrot.lane.b32.xlu1 %v1225_v60, %s2219_s12  ;;  %v1661_v40 = vpack.c.bf16 %v1656_v37, %v1656_v37  ;;  %v1813_v42 = vsel %vm527_vm7, %v1809_v2, %v1811_v24  ;;  %v2225_v27 = vmov 2   ;;  %v2226_v28 = vmov 3   ;;  %v1897_v58 = vld [vmem:[%s2806_s6] sm:$0xff]  ;;  %v1292_v60 = vpop.permute.xlu0 %1291  ;;  %v2136_v37 = vld [vmem:[%s2804_s4 + $0xc] sm:$0xf] }
 0x207   : > { %v1822_v39 = vpack.c.bf16 %v1817_v3, %v1817_v3  ;;  %v1742_v47 = vpack.c.bf16 %v1737_v31, %v1737_v31  ;;  %v1818_v49 = vmul.f32 %v1813_v42, %v2632_v46  ;;  %v2139_v24 = vld [vmem:[%s2804_s4 + $0x10] sm:$0xf] }
 0x208   : > { %v1230_v62 = vpop.permute.xlu1 %1229 }
 0x209   : > { %v1823_v54 = vpack.c.bf16 %v1818_v49, %v1818_v49 }
 0x20a   : > { %1449 = vrot.lane.b32.xlu1 %v1442_v21, %s2223_s15  ;;  %1295 = vrot.lane.b32.xlu0 %v1209_v22, %s2221_s14  ;;  %v1448_v50 = vpop.permute.xlu0 %1447 }
 0x20c   : > { %v1369_v63 = vpop.permute.xlu1 %1368 }
 0x20e   : > { %1372 = vrot.lane.b32.xlu1 %v1364_v15, %s2220_s13  ;;  %1666 = vrot.lane.b32.xlu0 %v1660_v0, %s2216_s28 }
 0x212   : > { %1585 = vrot.lane.b32.xlu1 %v1579_v30, %s2218_s30  ;;  %1451 = vrot.lane.b32.xlu0 %v1443_v32, %s2223_s15  ;;  %v1508_v30 = vmul.f32 %v2632_v46, %v2508_v14  ;;  %v1507_v32 = vmul.f32 %v2625_v41, %v2504_v13  ;;  %v2133_v46 = vld [vmem:[%s2804_s4 + $0x8] sm:$0xf] }
 0x214   : > { %v1512_v13 = vpack.c.bf16 %v1508_v30, %v1508_v30  ;;  %v1511_v14 = vpack.c.bf16 %v1507_v32, %v1507_v32 }
 0x216   : > { %1589 = vrot.lane.b32.xlu1 %v1581_v51, %s2218_s30  ;;  %1670 = vrot.lane.b32.xlu0 %v1662_v12, %s2216_s28  ;;  %v1206_v12 = vld [vmem:[%s2804_s4] sm:$0xf] }
 0x21a   : > { %1747 = vrot.lane.b32.xlu1 %v1741_v35, %s2215_s27  ;;  %1587 = vrot.lane.b32.xlu0 %v1580_v36, %s2218_s30  ;;  %v1517_v36 = vsel %vm776_vm4, %v1511_v14, 0 }
 0x21e   : > { %1668 = vrot.lane.b32.xlu1 %v1661_v40, %s2216_s28  ;;  %1828 = vrot.lane.b32.xlu0 %v1822_v39, %s2217_s29 }
 0x222   : > { %1751 = vrot.lane.b32.xlu1 %v1743_v44, %s2215_s27  ;;  %1749 = vrot.lane.b32.xlu0 %v1742_v47, %s2215_s27 }
 0x226   : > { %1830 = vrot.lane.b32.xlu1 %v1823_v54, %s2217_s29  ;;  %1832 = vrot.lane.b32.xlu0 %v1824_v53, %s2217_s29 }
 0x22a   : > { %1910 = vperm.xlu1 %2200, %v1907_v55   ;;  %1937 = vperm.xlu0 %2201, %v1907_v55  }
 0x22e   : > { %2202 = vset.pattern.permute.xlu1 %v2225_v27  ;;  %2204 = vset.pattern.permute.xlu0 %v2222_v48 }
 0x22f   : > { %1963 = vperm.xlu1 %2202, %v1907_v55   ;;  %1892 = vperm.xlu0 %2204, %v1889_v56   ;;  %v2145_v56 = vld [vmem:[%s2804_s4 + $0x18] sm:$0xf] }
 0x233   : > { %2203 = vset.pattern.permute.xlu1 %v2226_v28  ;;  %2025 = vperm.xlu0 %2204, %v2022_v57  }
 0x234   : > { %1989 = vperm.xlu1 %2203, %v1907_v55  }
 0x238   : > { %2205 = vset.pattern.permute.xlu1 %v2222_v48 }
 0x239   : > { %2017 = vperm.xlu1 %2205, %v2014_v9  }
 0x23d   : > { %1900 = vperm.xlu1 %2205, %v1897_v58  }
 0x274   : > { %v1232_v18 = vpop.permute.xlu0 %1231  ;;  %v1294_v21 = vpop.permute.xlu1 %1293 }
 0x275   : > { %v1235_v22 = vsel %vm463_vm5, %v1230_v62, %v1232_v18  ;;  %v1297_v17 = vsel %vm527_vm7, %v1292_v60, %v1294_v21  ;;  %v2148_v60 = vld [vmem:[%s2804_s4 + $0x1c] sm:$0xf] }
 0x276   : > { %v1242_v0 = vsel %vm776_vm4, %v1235_v22, 0  ;;  %v1303_v20 = vsel %vm776_vm4, %v1297_v17, 0  ;;  %v2151_v22 = vld [vmem:[%s2804_s4 + $0x20] sm:$0xf] }
 0x278   : > { %v1371_v23 = vpop.permute.xlu0 %1370  ;;  %v1234_v61 = vpop.permute.xlu1 %1233 }
 0x279   : > { %v1236_v15 = vsel %vm463_vm5, %v1232_v18, %v1234_v61  ;;  %v1374_v11 = vsel %vm617_vm9, %v1369_v63, %v1371_v23 }
 0x27a   : > { %2129 = vmatprep.subr.msk.bf16.mxu1 %vm776_vm4, %v1236_v15  ;;  %v1380_v33 = vsel %vm776_vm4, %v1374_v11, 0 }
 0x27b   : > { %1262 = vmatpush1.bf16.msra.mxu1 %v1242_v0  ;;  %v1905_v0 = vld [vmem:[%s2357_s26] sm:$0xf]  ;;  %s2157_s26 = sshll.u32 %s2813_s18, 4 }
 0x27c   : > { %v1450_v26 = vpop.permute.xlu1 %1449  ;;  %v1296_v29 = vpop.permute.xlu0 %1295  ;;  %s386_s16 = scalar_lea.vmem %s2811_s11, %s2157_s26 }
 0x27d   : > { %v1298_v19 = vsel %vm527_vm7, %v1294_v21, %v1296_v29  ;;  %v1453_v41 = vsel %vm709_vm10, %v1448_v50, %v1450_v26 }
 0x27e   : > { %2130 = vmatmul.mubr.msk.bf16.vlgmr.msra.gmra.mxu1 %vm1237_vm11, %v2128_v25  ;;  %2131 = vmatprep.subr.msk.bf16.mxu0 %vm776_vm4, %v1298_v19  ;;  %v1459_v3 = vsel %vm776_vm4, %v1453_v41, 0 }
 0x27f   : > { %1323 = vmatpush1.bf16.msra.mxu0 %v1303_v20  ;;  %1417 = vmatprep.mubr.bf16.mxu1 %v2222_v48 }
 0x280   : > { %v1373_v51 = vpop.permute.xlu1 %1372  ;;  %v1667_v52 = vpop.permute.xlu0 %1666 }
 0x281   : > { %v1375_v16 = vsel %vm617_vm9, %v1371_v23, %v1373_v51 }
 0x282   : > { %2132 = vmatmul.mubr.msk.bf16.vlgmr.msra.gmra.mxu0 %vm1237_vm11, %v1206_v12  ;;  %2134 = vmatprep.subr.msk.bf16.mxu1 %vm776_vm4, %v1375_v16 }
 0x283   : > { %1400 = vmatpush1.bf16.msra.mxu1 %v1380_v33  ;;  %1496 = vmatprep.mubr.bf16.mxu0 %v2222_v48 }
 0x284   : > { %2140 = vmatprep.subr.msk.bf16.mxu1 %vm776_vm4, %v1512_v13  ;;  %v1586_v34 = vpop.permute.xlu1 %1585  ;;  %v1452_v2 = vpop.permute.xlu0 %1451 }
 0x285   : > { %v1454_v35 = vsel %vm709_vm10, %v1450_v26, %v1452_v2  ;;  %v1906_v26 = vunpack.c.l.bf16 %v1905_v0 }
 0x286   : > { %2135 = vmatmul.mubr.msk.bf16.vlgmr.msra.gmra.mxu1 %vm1237_vm11, %v2133_v46  ;;  %2137 = vmatprep.subr.msk.bf16.mxu0 %vm776_vm4, %v1454_v35 }
 0x287   : > { %1479 = vmatpush1.bf16.msra.mxu0 %v1459_v3  ;;  %1537 = vmatpush1.bf16.msra.mxu1 %v1517_v36  ;;  %v1917_v11 = vrot.slane %v1906_v26, %v2314_v7  ;;  %v1943_v12 = vrot.slane %v1906_v26, %v2308_v5  ;;  %v1921_v16 = vrot.slane %v1906_v26, %v2500_v10 }
 0x288   : > { %v1590_v4 = vpop.permute.xlu1 %1589  ;;  %v1671_v38 = vpop.permute.xlu0 %1670  ;;  %1554 = vmatprep.mubr.bf16.mxu1 %v2222_v48  ;;  %v1947_v33 = vrot.slane %v1906_v26, %v2388_v43  ;;  %v1969_v41 = vrot.slane %v1906_v26, %v2311_v6 }
 0x289   : > { %v1953_v2 = vrot.slane %v1943_v12, %v2308_v5  ;;  %v1931_v10 = vrot.slane %v1921_v16, %v2314_v7 }
 0x28a   : > { %2138 = vmatmul.mubr.msk.bf16.vlgmr.msra.gmra.mxu0 %vm1237_vm11, %v2136_v37  ;;  %v1973_v37 = vrot.slane %v1906_v26, %v2414_v59  ;;  %v1957_v43 = vrot.slane %v1947_v33, %v2308_v5 }
 0x28b   : > { %1635 = vmatprep.mubr.bf16.mxu0 %v2222_v48 }
 0x28c   : > { %v1748_v31 = vpop.permute.xlu1 %1747  ;;  %v1588_v39 = vpop.permute.xlu0 %1587 }
 0x28d   : > { %v1592_v40 = vsel %vm686_vm3, %v1586_v34, %v1588_v39  ;;  %v1593_v42 = vsel %vm686_vm3, %v1588_v39, %v1590_v4  ;;  %v1927_v34 = vrot.slane %v1917_v11, %v2314_v7  ;;  %v1995_v4 = vrot.slane %v1906_v26, %v2317_v8 }
 0x28e   : > { %v1598_v44 = vsel %vm776_vm4, %v1592_v40, 0  ;;  %2141 = vmatmul.mubr.msk.bf16.vlgmr.msra.gmra.mxu1 %vm1237_vm11, %v2139_v24  ;;  %2143 = vmatprep.subr.msk.bf16.mxu0 %vm776_vm4, %v1593_v42  ;;  %v1999_v39 = vrot.slane %v1906_v26, %v2427_v1 }
 0x28f   : > { %1618 = vmatpush1.bf16.msra.mxu0 %v1598_v44  ;;  %1716 = vmatprep.mubr.bf16.mxu1 %v2222_v48  ;;  %v2005_v59 = vrot.slane %v1995_v4, %v2317_v8 }
 0x290   : > { %v1669_v47 = vpop.permute.xlu1 %1668  ;;  %v1829_v49 = vpop.permute.xlu0 %1828 }
 0x291   : > { %v1673_v53 = vsel %vm594_vm2, %v1667_v52, %v1669_v47  ;;  %v1674_v54 = vsel %vm594_vm2, %v1669_v47, %v1671_v38 }
 0x292   : > { %v1679_v55 = vsel %vm776_vm4, %v1673_v53, 0  ;;  %2144 = vmatmul.mubr.msk.bf16.vlgmr.msra.gmra.mxu0 %vm1237_vm11, %v2142_v45  ;;  %2146 = vmatprep.subr.msk.bf16.mxu1 %vm776_vm4, %v1674_v54 }
 0x293   : > { %1699 = vmatpush1.bf16.msra.mxu1 %v1679_v55  ;;  %1797 = vmatprep.mubr.bf16.mxu0 %v2222_v48 }
 0x294   : > { %v1752_v27 = vpop.permute.xlu1 %1751  ;;  %v1750_v57 = vpop.permute.xlu0 %1749 }
 0x295   : > { %v1754_v28 = vsel %vm440_vm0, %v1748_v31, %v1750_v57  ;;  %v1755_v9 = vsel %vm440_vm0, %v1750_v57, %v1752_v27  ;;  %v1979_v31 = vrot.slane %v1969_v41, %v2311_v6 }
 0x296   : > { %v1760_v58 = vsel %vm776_vm4, %v1754_v28, 0  ;;  %2147 = vmatmul.mubr.msk.bf16.vlgmr.msra.gmra.mxu1 %vm1237_vm11, %v2145_v56  ;;  %2149 = vmatprep.subr.msk.bf16.mxu0 %vm776_vm4, %v1755_v9  ;;  %v2009_v28 = vrot.slane %v1999_v39, %v2317_v8 }
 0x297   : > { %1780 = vmatpush1.bf16.msra.mxu0 %v1760_v58  ;;  %1878 = vmatprep.mubr.bf16.mxu1 %v2222_v48 }
 0x298   : > { %v1831_v62 = vpop.permute.xlu1 %1830  ;;  %v1833_v50 = vpop.permute.xlu0 %1832 }
 0x299   : > { %v1835_v63 = vsel %vm413_vm1, %v1829_v49, %v1831_v62  ;;  %v1836_v18 = vsel %vm413_vm1, %v1831_v62, %v1833_v50  ;;  %v1983_v49 = vrot.slane %v1973_v37, %v2311_v6 }
 0x29a   : > { %v1841_v21 = vsel %vm776_vm4, %v1835_v63, 0  ;;  %2150 = vmatmul.mubr.msk.bf16.vlgmr.msra.gmra.mxu0 %vm1237_vm11, %v2148_v60  ;;  %2152 = vmatprep.subr.msk.bf16.mxu1 %vm776_vm4, %v1836_v18 }
 0x29b   : > { %1861 = vmatpush1.bf16.msra.mxu1 %v1841_v21 }
 0x29e   : > { %2153 = vmatmul.mubr.msk.bf16.vlgmr.msra.gmra.mxu1 %vm1237_vm11, %v2151_v22 }
 0x2a5   : > { %v1911_v20 = vpop.permute.xlu1 %1910  ;;  %v1938_v36 = vpop.permute.xlu0 %1937 }
 0x2a6   : > { %v1932_v42 = vmul.f32 %v1927_v34, %v1911_v20  ;;  %v1958_v44 = vmul.f32 %v1953_v2, %v1938_v36  ;;  %v1933_v55 = vmul.f32 %v1931_v10, %v1911_v20  ;;  %v1959_v5 = vmul.f32 %v1957_v43, %v1938_v36 }
 0x2a8   : > { %v1960_v58 = vadd.f32 %v1958_v44, %v1932_v42  ;;  %v1961_v21 = vadd.f32 %v1959_v5, %v1933_v55 }
 0x2aa   : > { %v1964_v46 = vpop.permute.xlu1 %1963 }
 0x2ab   : > { %v1984_v57 = vmul.f32 %v1979_v31, %v1964_v46  ;;  %v1985_v50 = vmul.f32 %v1983_v49, %v1964_v46 }
 0x2ad   : > { %v1987_v8 = vadd.f32 %v1985_v50, %v1961_v21 }
 0x2af   : > { %v1990_v53 = vpop.permute.xlu1 %1989 }
 0x2b0   : > { %v2010_v63 = vmul.f32 %v2005_v59, %v1990_v53 }
 0x33e   : > { %v1281_v48 = vpop.f32.mrf.mxu1 }
 0x340   : > { %v1283_v23 = vpop.f32.mrf.mxu1 }
 0x342   : > { %v1285_v61 = vpop.f32.mrf.mxu1  ;;  %v1342_v15 = vpop.f32.mrf.mxu0 }
 0x343   : > { %v1343_v40 = vadd.f32 %v1342_v15, %v1281_v48  ;;  %v2011_v61 = vmul.f32 %v2009_v28, %v1990_v53  ;;  %v1893_v15 = vpop.permute.xlu0 %1892 }
 0x344   : > { %v1286_v17 = vpop.f32.mrf.mxu1  ;;  %v1344_v25 = vpop.f32.mrf.mxu0 }
 0x345   : > { %v1345_v54 = vadd.f32 %v1344_v25, %v1283_v23  ;;  %v1986_v23 = vadd.f32 %v1984_v57, %v1960_v58  ;;  %v2013_v12 = vadd.f32 %v2011_v61, %v1987_v8 }
 0x346   : > { %v1346_v29 = vpop.f32.mrf.mxu0  ;;  %v1419_v19 = vpop.f32.mrf.mxu1 }
 0x347   : > { %v1426_v7 = vadd.f32 %v1419_v19, %v1343_v40  ;;  %v2018_v29 = vpop.permute.xlu1 %2017  ;;  %v2012_v19 = vadd.f32 %v2010_v63, %v1986_v23 }
 0x348   : > { %v1347_v30 = vpop.f32.mrf.mxu0  ;;  %v1421_v32 = vpop.f32.mrf.mxu1 }
 0x349   : > { %v1427_v1 = vadd.f32 %v1421_v32, %v1345_v54 }
 0x34a   : > { %v1423_v51 = vpop.f32.mrf.mxu1  ;;  %v1498_v52 = vpop.f32.mrf.mxu0 }
 0x34b   : > { %v1505_v9 = vadd.f32 %v1498_v52, %v1426_v7  ;;  %v1901_v37 = vpop.permute.xlu1 %1900 }
 0x34c   : > { %v1424_v13 = vpop.f32.mrf.mxu1  ;;  %v1500_v14 = vpop.f32.mrf.mxu0 }
 0x34d   : > { %v1506_v6 = vadd.f32 %v1500_v14, %v1427_v1  ;;  %v2020_v13 = vmul.f32 %v2018_v29, %v2012_v19  ;;  %v2026_v14 = vpop.permute.xlu0 %2025 }
 0x34e   : > { %v1502_v35 = vpop.f32.mrf.mxu0  ;;  %v1556_v3 = vpop.f32.mrf.mxu1 }
 0x34f   : > { %v1563_v18 = vadd.f32 %v1556_v3, %v1505_v9  ;;  %v2021_v35 = vmul.f32 %v2018_v29, %v2013_v12  ;;  %v2028_v10 = vadd.f32 %v2026_v14, %v2020_v13 }
 0x350   : > { %v1503_v38 = vpop.f32.mrf.mxu0  ;;  %v1558_v24 = vpop.f32.mrf.mxu1 }
 0x351   : > { %v1564_v0 = vadd.f32 %v1558_v24, %v1506_v6  ;;  %v2029_v31 = vadd.f32 %v2026_v14, %v2021_v35 }
 0x352   : > { %v1560_v45 = vpop.f32.mrf.mxu1  ;;  %v1637_v47 = vpop.f32.mrf.mxu0 }
 0x353   : > { %v1644_v17 = vadd.f32 %v1637_v47, %v1563_v18 }
 0x354   : > { %v1561_v56 = vpop.f32.mrf.mxu1  ;;  %v1639_v27 = vpop.f32.mrf.mxu0 }
 0x355   : > { %v1645_v20 = vadd.f32 %v1639_v27, %v1564_v0 }
 0x356   : > { %v1641_v60 = vpop.f32.mrf.mxu0  ;;  %v1718_v62 = vpop.f32.mrf.mxu1 }
 0x357   : > { %v1725_v30 = vadd.f32 %v1718_v62, %v1644_v17 }
 0x358   : > { %v1642_v22 = vpop.f32.mrf.mxu0  ;;  %v1720_v48 = vpop.f32.mrf.mxu1 }
 0x359   : > { %v1726_v51 = vadd.f32 %v1720_v48, %v1645_v20 }
 0x35a   : > { %v1722_v25 = vpop.f32.mrf.mxu1  ;;  %v1799_v26 = vpop.f32.mrf.mxu0 }
 0x35b   : > { %v1806_v52 = vadd.f32 %v1799_v26, %v1725_v30 }
 0x35c   : > { %v1723_v32 = vpop.f32.mrf.mxu1  ;;  %v1801_v11 = vpop.f32.mrf.mxu0 }
 0x35d   : > { %v1807_v41 = vadd.f32 %v1801_v11, %v1726_v51 }
 0x35e   : > { %v1880_v16 = vpop.f32.mrf.mxu1  ;;  %v1803_v33 = vpop.f32.mrf.mxu0 }
 0x35f   : > { %v1887_v46 = vadd.f32 %v1880_v16, %v1806_v52 }
 0x360   : > { %v1882_v34 = vpop.f32.mrf.mxu1  ;;  %v1804_v2 = vpop.f32.mrf.mxu0 }
 0x361   : > { %v1888_v3 = vadd.f32 %v1882_v34, %v1807_v41  ;;  %v1895_v36 = vmul.f32 %v1893_v15, %v1887_v46 }
 0x362   : > { %v1884_v4 = vpop.f32.mrf.mxu1 }
 0x363   : > { %v1896_v43 = vmul.f32 %v1893_v15, %v1888_v3  ;;  %v1903_v38 = vadd.f32 %v1901_v37, %v1895_v36 }
 0x364   : > { %v1885_v24 = vpop.f32.mrf.mxu1 }
 0x365   : > { %v1904_v39 = vadd.f32 %v1901_v37, %v1896_v43  ;;  %v2030_v40 = vadd.f32 %v2028_v10, %v1903_v38 }
 0x367   : > { %v2031_v42 = vadd.f32 %v2029_v31, %v1904_v39  ;;  %v2032_v44 = vmax.f32 %v2030_v40, 0.0 }
 0x369   : > { %v2033_v45 = vmax.f32 %v2031_v42, 0.0  ;;  %2034 = vst [vmem:[%s386_s16] sm:$0xff] %v2032_v44 }
 0x36b   : > { %2035 = vst [vmem:[%s386_s16 + $0x8] sm:$0xff] %v2033_v45 }
 0x36c PF: > { %s21_s17 = sadd.s32 1, %s2212_s17  }
 0x36d   : > { %p18_p4 = scmp.ge.s32.totalorder %s21_s17, 4  }
 0x36f   :  { %20 = sbr.rel (!%p18_p4) target bundleno = 1 (0x1), region = 110 }

</bundles_post_ra>
